<compile_context>
chip_gen: v6e
topology: v6e:2x2x1
jax: 0.10.0
libtpu: 0.0.40
codegen_flags: <defaults>
</compile_context>

<pallas_src>
import functools

import jax
import jax.numpy as jnp
from jax.experimental import pallas as pl
from jax.experimental.pallas import tpu as pltpu


def _round_up(a, b):
    return (a + b - 1) // b * b


def _gat_kernel(src_ref, trg_ref,                      # scalar-prefetch (SMEM) edge indices
                x_ref, wp_ref, score_w_ref, bias_ref,  # resident VMEM inputs
                *rest,                                  # [ws_ref], out_ref, scratch refs
                E, TE, H, F_out, has_skip_proj):
    f32 = jnp.float32
    HF = H * F_out

    if has_skip_proj:
        ws_ref = rest[0]
        rest = rest[1:]
    out_ref = rest[0]
    node_scr, strg_scr, acc_scr, gath_scr, sgt_scr = rest[1:]

    eb = pl.program_id(0)

    # ---- grid step 0: dense node-level compute (MXU) + accumulator init ----
    @pl.when(eb == 0)
    def _init():
        proj = jnp.dot(x_ref[...], wp_ref[...], preferred_element_type=f32)   # (Np, HF)
        sc = jnp.dot(proj, score_w_ref[...], preferred_element_type=f32)      # (Np, 2H)
        node_scr[:, 0:HF] = proj                 # fused node table: [proj | scores_src]
        node_scr[:, HF:HF + H] = sc[:, 0:H]
        strg_scr[...] = sc[:, H:2 * H]           # scores_trg
        acc_scr[...] = jnp.zeros_like(acc_scr)   # [numerator | denominator]

    # Upper bound on every per-edge score (LeakyReLU is monotone) -> exp() <= 1.
    m = jnp.max(node_scr[:, HF:HF + H]) + jnp.max(strg_scr[...])
    m = jnp.where(m > 0, m, 0.2 * m)

    base = eb * TE

    # ---- gather: per-edge rows of the node tables (index-based, no one-hot) ----
    def _gather(i, carry):
        s = src_ref[base + i]
        t = trg_ref[base + i]
        gath_scr[pl.ds(i, 1), :] = node_scr[pl.ds(s, 1), :]   # proj[src] | ssrc[src]
        sgt_scr[pl.ds(i, 1), :] = strg_scr[pl.ds(t, 1), :]    # strg[trg]
        return carry

    jax.lax.fori_loop(0, TE, _gather, 0, unroll=(TE <= 32))

    gblk = gath_scr[...]                          # (TE, HF + H)
    feat = gblk[:, 0:HF]                          # lifted source features
    s_e = gblk[:, HF:HF + H] + sgt_scr[...]       # (TE, H)
    s_e = jnp.where(s_e > 0, s_e, 0.2 * s_e)      # LeakyReLU(0.2)
    p = jnp.exp(s_e - m)                          # stabilized exp scores

    # Zero-out the contribution of padded edges.
    eidx = jax.lax.broadcasted_iota(jnp.int32, (TE, 1), 0) + base
    p = jnp.where(eidx < E, p, 0.0)

    # Per-head -> per-feature-column 0/1 expansion, built from iota (no DMA).
    rows = jax.lax.broadcasted_iota(jnp.int32, (H, HF), 0)
    cols = jax.lax.broadcasted_iota(jnp.int32, (H, HF), 1)
    expand = jnp.logical_and(cols >= rows * F_out,
                             cols < (rows + 1) * F_out).astype(f32)

    # Reuse gath_scr as the scatter payload: [exp * feat | exp].
    gath_scr[:, 0:HF] = feat * jnp.dot(p, expand, preferred_element_type=f32)
    gath_scr[:, HF:HF + H] = p

    # ---- scatter-add into the resident [numer | denom] accumulator ----
    def _scatter(i, carry):
        t = trg_ref[base + i]
        acc_scr[pl.ds(t, 1), :] = acc_scr[pl.ds(t, 1), :] + gath_scr[pl.ds(i, 1), :]
        return carry

    jax.lax.fori_loop(0, TE, _scatter, 0, unroll=(TE <= 32))

    # ---- last grid step: normalize, skip connection, bias, ELU ----
    @pl.when(eb == pl.num_programs(0) - 1)
    def _finalize():
        acc = acc_scr[...]
        numer = acc[:, 0:HF]
        denom = acc[:, HF:HF + H]
        recip = 1.0 / (denom + 1e-16)
        agg = numer * jnp.dot(recip, expand, preferred_element_type=f32)
        if has_skip_proj:
            skip = jnp.dot(x_ref[...], ws_ref[...], preferred_element_type=f32)
        else:
            # F_out == F_in: broadcast input features across heads (torch unsqueeze(1)).
            skip = jnp.concatenate([x_ref[...]] * H, axis=1)
        v = agg + skip + bias_ref[...]
        # ELU; clamp the exp argument so large positives never transiently overflow.
        out_ref[...] = jnp.where(v > 0.0, v, jnp.exp(jnp.minimum(v, 0.0)) - 1.0)


def gat_layer_forward(x, edge_index, params):
    """GATLayer forward (eval mode, concat=True, bias=True, add_skip_connection=True)."""
    N, F_in = x.shape
    E = edge_index.shape[1]
    scoring_src = params["scoring_fn_source"]             # (H, F_out)
    scoring_trg = params["scoring_fn_target"]             # (H, F_out)
    H, F_out = scoring_src.shape
    HF = H * F_out
    f32 = jnp.float32

    w_proj = params["linear_proj_w"].T.astype(f32)        # (F_in, HF)
    bias = params["bias"].reshape(1, HF).astype(f32)

    # Fused block-diagonal scoring weights: proj @ score_w -> [scores_src | scores_trg].
    eye_h = jnp.eye(H, dtype=f32)
    asrc = jnp.transpose(eye_h[:, :, None] * scoring_src.astype(f32)[:, None, :],
                         (0, 2, 1)).reshape(HF, H)
    atrg = jnp.transpose(eye_h[:, :, None] * scoring_trg.astype(f32)[:, None, :],
                         (0, 2, 1)).reshape(HF, H)
    score_w = jnp.concatenate([asrc, atrg], axis=1)        # (HF, 2H)

    has_skip_proj = (F_out != F_in)

    # Pad nodes to a sublane multiple; padded rows never receive edges.
    N_pad = _round_up(max(N, 8), 8)
    x_pad = jnp.zeros((N_pad, F_in), f32).at[:N, :].set(x.astype(f32))

    # Pad edges to whole edge tiles; padded edges are masked inside the kernel.
    TE = 16 if E <= 64 else 128
    E_pad = _round_up(E, TE)
    num_eb = E_pad // TE
    src = jnp.zeros((E_pad,), jnp.int32).at[:E].set(edge_index[0].astype(jnp.int32))
    trg = jnp.zeros((E_pad,), jnp.int32).at[:E].set(edge_index[1].astype(jnp.int32))

    inputs = [x_pad, w_proj, score_w, bias]
    if has_skip_proj:
        inputs.append(params["skip_proj_w"].T.astype(f32))

    def _full_spec(shape):
        return pl.BlockSpec(shape, lambda i, s_ref, t_ref: (0,) * len(shape))

    kernel = functools.partial(_gat_kernel, E=E, TE=TE, H=H, F_out=F_out,
                               has_skip_proj=has_skip_proj)

    grid_spec = pltpu.PrefetchScalarGridSpec(
        num_scalar_prefetch=2,                       # src / trg edge indices -> SMEM
        grid=(num_eb,),                              # edge-tile reduction axis
        in_specs=[_full_spec(a.shape) for a in inputs],
        out_specs=pl.BlockSpec((N_pad, HF), lambda i, s_ref, t_ref: (0, 0)),
        scratch_shapes=[
            pltpu.VMEM((N_pad, HF + H), f32),        # node table [proj | scores_src]
            pltpu.VMEM((N_pad, H), f32),             # scores_trg
            pltpu.VMEM((N_pad, HF + H), f32),        # accumulator [numer | denom]
            pltpu.VMEM((TE, HF + H), f32),           # gathered edge rows / scatter payload
            pltpu.VMEM((TE, H), f32),                # gathered target scores
        ],
    )

    out = pl.pallas_call(
        kernel,
        out_shape=jax.ShapeDtypeStruct((N_pad, HF), f32),
        grid_spec=grid_spec,
        compiler_params=pltpu.CompilerParams(
            dimension_semantics=("arbitrary",),      # edge axis is a reduction
            vmem_limit_bytes=32 * 1024 * 1024,
        ),
    )(src, trg, *inputs)
    return out[:N], edge_index


def _reference_forward(x, edge_index, params):
    """Pure-JAX reference mirroring the PyTorch forward (eval mode)."""
    scoring_src = params["scoring_fn_source"]
    scoring_trg = params["scoring_fn_target"]
    H, F_out = scoring_src.shape
    N, F_in = x.shape
    proj = x @ params["linear_proj_w"].T                     # (N, H*F_out)
    proj_h = proj.reshape(N, H, F_out)
    ss = (proj_h * scoring_src[None]).sum(-1)                # (N, H)
    st = (proj_h * scoring_trg[None]).sum(-1)
    src, trg = edge_index[0], edge_index[1]
    s_e = ss[src] + st[trg]
    s_e = jnp.where(s_e > 0, s_e, 0.2 * s_e)
    s_e = s_e - s_e.max()
    e = jnp.exp(s_e)
    denom = jax.ops.segment_sum(e, trg, num_segments=N)
    attn = e / (denom[trg] + 1e-16)
    w = proj_h[src] * attn[:, :, None]
    out = jax.ops.segment_sum(w, trg, num_segments=N)        # (N, H, F_out)
    if F_out == F_in:
        out = out + x[:, None, :]
    else:
        out = out + (x @ params["skip_proj_w"].T).reshape(N, H, F_out)
    out = out.reshape(N, H * F_out) + params["bias"]
    return jnp.where(out > 0, out, jnp.exp(out) - 1.0)


def _xavier_uniform(key, shape, fan_in, fan_out):
    bound = (6.0 / (fan_in + fan_out)) ** 0.5
    return jax.random.uniform(key, shape, jnp.float32, -bound, bound)


if __name__ == "__main__":
    # Small deterministic problem: N nodes, E edges, H heads.
    N, F_in, F_out, H, E = 12, 16, 8, 4, 48

    key = jax.random.PRNGKey(0)
    k_x, k_src, k_trg, k_wp, k_ws, k_as, k_at = jax.random.split(key, 7)

    x = jax.random.normal(k_x, (N, F_in), jnp.float32)
    src = jax.random.randint(k_src, (E,), 0, N, jnp.int32)
    trg = jax.random.randint(k_trg, (E,), 0, N, jnp.int32)
    edge_index = jnp.stack([src, trg], axis=0)               # (2, E)

    params = {
        "linear_proj_w": _xavier_uniform(k_wp, (H * F_out, F_in), F_in, H * F_out),
        "skip_proj_w":   _xavier_uniform(k_ws, (H * F_out, F_in), F_in, H * F_out),
        "scoring_fn_source": _xavier_uniform(k_as, (H, F_out), H * F_out, F_out),
        "scoring_fn_target": _xavier_uniform(k_at, (H, F_out), H * F_out, F_out),
        "bias": jnp.zeros((H * F_out,), jnp.float32),
    }

    out, _ = gat_layer_forward(x, edge_index, params)
    out = jax.block_until_ready(out)

    ref = _reference_forward(x, edge_index, params)
    assert out.shape == (N, H * F_out)
    assert jnp.allclose(out, ref, rtol=1e-4, atol=1e-4), "Pallas kernel mismatch vs reference"

    print("KERNEL_OK")
</pallas_src>

<mosaic_0001>
module attributes {stable_mosaic.version = 11 : i64} {
  func.func @_gat_kernel(%arg0: i32, %arg1: memref<48xi32, #tpu.memory_space<smem>>, %arg2: memref<48xi32, #tpu.memory_space<smem>>, %arg3: memref<16x16xf32, #tpu.memory_space<vmem>>, %arg4: memref<16x32xf32, #tpu.memory_space<vmem>>, %arg5: memref<32x8xf32, #tpu.memory_space<vmem>>, %arg6: memref<1x32xf32, #tpu.memory_space<vmem>>, %arg7: memref<16x32xf32, #tpu.memory_space<vmem>>, %arg8: memref<16x32xf32, #tpu.memory_space<vmem>>, %arg9: memref<16x36xf32, #tpu.memory_space<vmem>>, %arg10: memref<16x4xf32, #tpu.memory_space<vmem>>, %arg11: memref<16x36xf32, #tpu.memory_space<vmem>>, %arg12: memref<16x36xf32, #tpu.memory_space<vmem>>, %arg13: memref<16x4xf32, #tpu.memory_space<vmem>>) attributes {dimension_semantics = [#tpu.dimension_semantics<arbitrary>], iteration_bounds = array<i64: 3>, scalar_prefetch = 2 : i64, scratch_operands = 5 : i64, tpu.core_type = #tpu.core_type<tc>, window_params = [{pipeline_mode = #tpu.pipeline_mode<synchronous>, transform_indices = @transform_0, window_bounds = array<i64: 16, 16>}, {pipeline_mode = #tpu.pipeline_mode<synchronous>, transform_indices = @transform_1, window_bounds = array<i64: 16, 32>}, {pipeline_mode = #tpu.pipeline_mode<synchronous>, transform_indices = @transform_2, window_bounds = array<i64: 32, 8>}, {pipeline_mode = #tpu.pipeline_mode<synchronous>, transform_indices = @transform_3, window_bounds = array<i64: 1, 32>}, {pipeline_mode = #tpu.pipeline_mode<synchronous>, transform_indices = @transform_4, window_bounds = array<i64: 16, 32>}, {pipeline_mode = #tpu.pipeline_mode<synchronous>, transform_indices = @transform_5, window_bounds = array<i64: 16, 32>}]} {
    %c0_i32 = arith.constant 0 : i32
    %0 = arith.cmpi eq, %arg0, %c0_i32 : i32
    %1 = arith.extui %0 : i1 to i32
    %c0_i32_0 = arith.constant 0 : i32
    %2 = arith.cmpi ne, %1, %c0_i32_0 : i32
    scf.if %2 {
      %c0_154 = arith.constant 0 : index
      %c0_155 = arith.constant 0 : index
      %444 = vector.load %arg3[%c0_154, %c0_155] : memref<16x16xf32, #tpu.memory_space<vmem>>, vector<16x16xf32>
      %c0_156 = arith.constant 0 : index
      %c0_157 = arith.constant 0 : index
      %445 = vector.load %arg4[%c0_156, %c0_157] : memref<16x32xf32, #tpu.memory_space<vmem>>, vector<16x32xf32>
      %cst_158 = arith.constant dense<0.000000e+00> : vector<16x32xf32>
      %446 = tpu.matmul %444, %445, %cst_158 {dimension_numbers = #tpu.dot_dimension_numbers<[1], [0], [0], [1], [0, 0, 1, 1], [], []>} : vector<16x16xf32>, vector<16x32xf32>, vector<16x32xf32> -> vector<16x32xf32>
      %c0_159 = arith.constant 0 : index
      %c0_160 = arith.constant 0 : index
      %447 = vector.load %arg5[%c0_159, %c0_160] : memref<32x8xf32, #tpu.memory_space<vmem>>, vector<32x8xf32>
      %cst_161 = arith.constant dense<0.000000e+00> : vector<16x8xf32>
      %448 = tpu.matmul %446, %447, %cst_161 {dimension_numbers = #tpu.dot_dimension_numbers<[1], [0], [0], [1], [0, 0, 1, 1], [], []>} : vector<16x32xf32>, vector<32x8xf32>, vector<16x8xf32> -> vector<16x8xf32>
      %c0_162 = arith.constant 0 : index
      %c0_163 = arith.constant 0 : index
      %449 = vector.load %arg9[%c0_162, %c0_163] : memref<16x36xf32, #tpu.memory_space<vmem>>, vector<16x32xf32>
      tpu.vector_store %arg9[%c0_162, %c0_163], %446 {strides = array<i32>} : memref<16x36xf32, #tpu.memory_space<vmem>>, vector<16x32xf32>,
      %450 = vector.extract_strided_slice %448 {offsets = [0, 0], sizes = [16, 4], strides = [1, 1]} : vector<16x8xf32> to vector<16x4xf32>
      %c0_164 = arith.constant 0 : index
      %c32_165 = arith.constant 32 : index
      %451 = vector.load %arg9[%c0_164, %c32_165] : memref<16x36xf32, #tpu.memory_space<vmem>>, vector<16x4xf32>
      tpu.vector_store %arg9[%c0_164, %c32_165], %450 {strides = array<i32>} : memref<16x36xf32, #tpu.memory_space<vmem>>, vector<16x4xf32>,
      %452 = vector.extract_strided_slice %448 {offsets = [0, 4], sizes = [16, 4], strides = [1, 1]} : vector<16x8xf32> to vector<16x4xf32>
      %c0_166 = arith.constant 0 : index
      %c0_167 = arith.constant 0 : index
      %453 = vector.load %arg10[%c0_166, %c0_167] : memref<16x4xf32, #tpu.memory_space<vmem>>, vector<16x4xf32>
      tpu.vector_store %arg10[%c0_166, %c0_167], %452 {strides = array<i32>} : memref<16x4xf32, #tpu.memory_space<vmem>>, vector<16x4xf32>,
      %cst_168 = arith.constant 0.000000e+00 : f32
      %454 = vector.broadcast %cst_168 : f32 to vector<16x36xf32>
      %c0_169 = arith.constant 0 : index
      %c0_170 = arith.constant 0 : index
      %455 = vector.load %arg11[%c0_169, %c0_170] : memref<16x36xf32, #tpu.memory_space<vmem>>, vector<16x36xf32>
      tpu.vector_store %arg11[%c0_169, %c0_170], %454 {strides = array<i32>} : memref<16x36xf32, #tpu.memory_space<vmem>>, vector<16x36xf32>,
    } else {
    }
    %c0 = arith.constant 0 : index
    %c32 = arith.constant 32 : index
    %3 = vector.load %arg9[%c0, %c32] : memref<16x36xf32, #tpu.memory_space<vmem>>, vector<16x4xf32>
    %4 = vector.shape_cast %3 : vector<16x4xf32> to vector<1x16x4xf32>
    %cst = arith.constant dense<0xFF800000> : vector<1xf32>
    %5 = vector.multi_reduction <maximumf>, %4, %cst [1, 2] : vector<1x16x4xf32> to vector<1xf32>
    %6 = vector.shape_cast %5 : vector<1xf32> to vector<1x1x1xf32>
    %7 = vector.extract %6[0, 0, 0] : f32 from vector<1x1x1xf32>
    %c0_1 = arith.constant 0 : index
    %c0_2 = arith.constant 0 : index
    %8 = vector.load %arg10[%c0_1, %c0_2] : memref<16x4xf32, #tpu.memory_space<vmem>>, vector<16x4xf32>
    %9 = vector.shape_cast %8 : vector<16x4xf32> to vector<1x16x4xf32>
    %cst_3 = arith.constant dense<0xFF800000> : vector<1xf32>
    %10 = vector.multi_reduction <maximumf>, %9, %cst_3 [1, 2] : vector<1x16x4xf32> to vector<1xf32>
    %11 = vector.shape_cast %10 : vector<1xf32> to vector<1x1x1xf32>
    %12 = vector.extract %11[0, 0, 0] : f32 from vector<1x1x1xf32>
    %13 = arith.addf %7, %12 : f32
    %cst_4 = arith.constant 0.000000e+00 : f32
    %14 = arith.cmpf ogt, %13, %cst_4 : f32
    %cst_5 = arith.constant 2.000000e-01 : f32
    %15 = arith.mulf %cst_5, %13 : f32
    %16 = arith.select %14, %13, %15 : f32
    %c16_i32 = arith.constant 16 : i32
    %17 = arith.muli %arg0, %c16_i32 : i32
    %c0_i32_6 = arith.constant 0 : i32
    %18 = arith.addi %17, %c0_i32_6 : i32
    %19 = arith.index_cast %18 : i32 to index
    %20 = memref.load %arg1[%19] : memref<48xi32, #tpu.memory_space<smem>>
    %21 = arith.addi %17, %c0_i32_6 : i32
    %22 = arith.index_cast %21 : i32 to index
    %23 = memref.load %arg2[%22] : memref<48xi32, #tpu.memory_space<smem>>
    %24 = arith.index_cast %20 : i32 to index
    %c0_7 = arith.constant 0 : index
    %25 = vector.load %arg9[%24, %c0_7] : memref<16x36xf32, #tpu.memory_space<vmem>>, vector<1x36xf32>
    %26 = arith.index_cast %c0_i32_6 : i32 to index
    %c0_8 = arith.constant 0 : index
    %27 = vector.load %arg12[%26, %c0_8] : memref<16x36xf32, #tpu.memory_space<vmem>>, vector<1x36xf32>
    tpu.vector_store %arg12[%26, %c0_8], %25 {strides = array<i32>} : memref<16x36xf32, #tpu.memory_space<vmem>>, vector<1x36xf32>,
    %28 = arith.index_cast %23 : i32 to index
    %c0_9 = arith.constant 0 : index
    %29 = vector.load %arg10[%28, %c0_9] : memref<16x4xf32, #tpu.memory_space<vmem>>, vector<1x4xf32>
    %30 = arith.index_cast %c0_i32_6 : i32 to index
    %c0_10 = arith.constant 0 : index
    %31 = vector.load %arg13[%30, %c0_10] : memref<16x4xf32, #tpu.memory_space<vmem>>, vector<1x4xf32>
    tpu.vector_store %arg13[%30, %c0_10], %29 {strides = array<i32>} : memref<16x4xf32, #tpu.memory_space<vmem>>, vector<1x4xf32>,
    %c1_i32 = arith.constant 1 : i32
    %32 = arith.addi %17, %c1_i32 : i32
    %33 = arith.index_cast %32 : i32 to index
    %34 = memref.load %arg1[%33] : memref<48xi32, #tpu.memory_space<smem>>
    %35 = arith.addi %17, %c1_i32 : i32
    %36 = arith.index_cast %35 : i32 to index
    %37 = memref.load %arg2[%36] : memref<48xi32, #tpu.memory_space<smem>>
    %38 = arith.index_cast %34 : i32 to index
    %c0_11 = arith.constant 0 : index
    %39 = vector.load %arg9[%38, %c0_11] : memref<16x36xf32, #tpu.memory_space<vmem>>, vector<1x36xf32>
    %40 = arith.index_cast %c1_i32 : i32 to index
    %c0_12 = arith.constant 0 : index
    %41 = vector.load %arg12[%40, %c0_12] : memref<16x36xf32, #tpu.memory_space<vmem>>, vector<1x36xf32>
    tpu.vector_store %arg12[%40, %c0_12], %39 {strides = array<i32>} : memref<16x36xf32, #tpu.memory_space<vmem>>, vector<1x36xf32>,
    %42 = arith.index_cast %37 : i32 to index
    %c0_13 = arith.constant 0 : index
    %43 = vector.load %arg10[%42, %c0_13] : memref<16x4xf32, #tpu.memory_space<vmem>>, vector<1x4xf32>
    %44 = arith.index_cast %c1_i32 : i32 to index
    %c0_14 = arith.constant 0 : index
    %45 = vector.load %arg13[%44, %c0_14] : memref<16x4xf32, #tpu.memory_space<vmem>>, vector<1x4xf32>
    tpu.vector_store %arg13[%44, %c0_14], %43 {strides = array<i32>} : memref<16x4xf32, #tpu.memory_space<vmem>>, vector<1x4xf32>,
    %c2_i32 = arith.constant 2 : i32
    %46 = arith.addi %17, %c2_i32 : i32
    %47 = arith.index_cast %46 : i32 to index
    %48 = memref.load %arg1[%47] : memref<48xi32, #tpu.memory_space<smem>>
    %49 = arith.addi %17, %c2_i32 : i32
    %50 = arith.index_cast %49 : i32 to index
    %51 = memref.load %arg2[%50] : memref<48xi32, #tpu.memory_space<smem>>
    %52 = arith.index_cast %48 : i32 to index
    %c0_15 = arith.constant 0 : index
    %53 = vector.load %arg9[%52, %c0_15] : memref<16x36xf32, #tpu.memory_space<vmem>>, vector<1x36xf32>
    %54 = arith.index_cast %c2_i32 : i32 to index
    %c0_16 = arith.constant 0 : index
    %55 = vector.load %arg12[%54, %c0_16] : memref<16x36xf32, #tpu.memory_space<vmem>>, vector<1x36xf32>
    tpu.vector_store %arg12[%54, %c0_16], %53 {strides = array<i32>} : memref<16x36xf32, #tpu.memory_space<vmem>>, vector<1x36xf32>,
    %56 = arith.index_cast %51 : i32 to index
    %c0_17 = arith.constant 0 : index
    %57 = vector.load %arg10[%56, %c0_17] : memref<16x4xf32, #tpu.memory_space<vmem>>, vector<1x4xf32>
    %58 = arith.index_cast %c2_i32 : i32 to index
    %c0_18 = arith.constant 0 : index
    %59 = vector.load %arg13[%58, %c0_18] : memref<16x4xf32, #tpu.memory_space<vmem>>, vector<1x4xf32>
    tpu.vector_store %arg13[%58, %c0_18], %57 {strides = array<i32>} : memref<16x4xf32, #tpu.memory_space<vmem>>, vector<1x4xf32>,
    %c3_i32 = arith.constant 3 : i32
    %60 = arith.addi %17, %c3_i32 : i32
    %61 = arith.index_cast %60 : i32 to index
    %62 = memref.load %arg1[%61] : memref<48xi32, #tpu.memory_space<smem>>
    %63 = arith.addi %17, %c3_i32 : i32
    %64 = arith.index_cast %63 : i32 to index
    %65 = memref.load %arg2[%64] : memref<48xi32, #tpu.memory_space<smem>>
    %66 = arith.index_cast %62 : i32 to index
    %c0_19 = arith.constant 0 : index
    %67 = vector.load %arg9[%66, %c0_19] : memref<16x36xf32, #tpu.memory_space<vmem>>, vector<1x36xf32>
    %68 = arith.index_cast %c3_i32 : i32 to index
    %c0_20 = arith.constant 0 : index
    %69 = vector.load %arg12[%68, %c0_20] : memref<16x36xf32, #tpu.memory_space<vmem>>, vector<1x36xf32>
    tpu.vector_store %arg12[%68, %c0_20], %67 {strides = array<i32>} : memref<16x36xf32, #tpu.memory_space<vmem>>, vector<1x36xf32>,
    %70 = arith.index_cast %65 : i32 to index
    %c0_21 = arith.constant 0 : index
    %71 = vector.load %arg10[%70, %c0_21] : memref<16x4xf32, #tpu.memory_space<vmem>>, vector<1x4xf32>
    %72 = arith.index_cast %c3_i32 : i32 to index
    %c0_22 = arith.constant 0 : index
    %73 = vector.load %arg13[%72, %c0_22] : memref<16x4xf32, #tpu.memory_space<vmem>>, vector<1x4xf32>
    tpu.vector_store %arg13[%72, %c0_22], %71 {strides = array<i32>} : memref<16x4xf32, #tpu.memory_space<vmem>>, vector<1x4xf32>,
    %c4_i32 = arith.constant 4 : i32
    %74 = arith.addi %17, %c4_i32 : i32
    %75 = arith.index_cast %74 : i32 to index
    %76 = memref.load %arg1[%75] : memref<48xi32, #tpu.memory_space<smem>>
    %77 = arith.addi %17, %c4_i32 : i32
    %78 = arith.index_cast %77 : i32 to index
    %79 = memref.load %arg2[%78] : memref<48xi32, #tpu.memory_space<smem>>
    %80 = arith.index_cast %76 : i32 to index
    %c0_23 = arith.constant 0 : index
    %81 = vector.load %arg9[%80, %c0_23] : memref<16x36xf32, #tpu.memory_space<vmem>>, vector<1x36xf32>
    %82 = arith.index_cast %c4_i32 : i32 to index
    %c0_24 = arith.constant 0 : index
    %83 = vector.load %arg12[%82, %c0_24] : memref<16x36xf32, #tpu.memory_space<vmem>>, vector<1x36xf32>
    tpu.vector_store %arg12[%82, %c0_24], %81 {strides = array<i32>} : memref<16x36xf32, #tpu.memory_space<vmem>>, vector<1x36xf32>,
    %84 = arith.index_cast %79 : i32 to index
    %c0_25 = arith.constant 0 : index
    %85 = vector.load %arg10[%84, %c0_25] : memref<16x4xf32, #tpu.memory_space<vmem>>, vector<1x4xf32>
    %86 = arith.index_cast %c4_i32 : i32 to index
    %c0_26 = arith.constant 0 : index
    %87 = vector.load %arg13[%86, %c0_26] : memref<16x4xf32, #tpu.memory_space<vmem>>, vector<1x4xf32>
    tpu.vector_store %arg13[%86, %c0_26], %85 {strides = array<i32>} : memref<16x4xf32, #tpu.memory_space<vmem>>, vector<1x4xf32>,
    %c5_i32 = arith.constant 5 : i32
    %88 = arith.addi %17, %c5_i32 : i32
    %89 = arith.index_cast %88 : i32 to index
    %90 = memref.load %arg1[%89] : memref<48xi32, #tpu.memory_space<smem>>
    %91 = arith.addi %17, %c5_i32 : i32
    %92 = arith.index_cast %91 : i32 to index
    %93 = memref.load %arg2[%92] : memref<48xi32, #tpu.memory_space<smem>>
    %94 = arith.index_cast %90 : i32 to index
    %c0_27 = arith.constant 0 : index
    %95 = vector.load %arg9[%94, %c0_27] : memref<16x36xf32, #tpu.memory_space<vmem>>, vector<1x36xf32>
    %96 = arith.index_cast %c5_i32 : i32 to index
    %c0_28 = arith.constant 0 : index
    %97 = vector.load %arg12[%96, %c0_28] : memref<16x36xf32, #tpu.memory_space<vmem>>, vector<1x36xf32>
    tpu.vector_store %arg12[%96, %c0_28], %95 {strides = array<i32>} : memref<16x36xf32, #tpu.memory_space<vmem>>, vector<1x36xf32>,
    %98 = arith.index_cast %93 : i32 to index
    %c0_29 = arith.constant 0 : index
    %99 = vector.load %arg10[%98, %c0_29] : memref<16x4xf32, #tpu.memory_space<vmem>>, vector<1x4xf32>
    %100 = arith.index_cast %c5_i32 : i32 to index
    %c0_30 = arith.constant 0 : index
    %101 = vector.load %arg13[%100, %c0_30] : memref<16x4xf32, #tpu.memory_space<vmem>>, vector<1x4xf32>
    tpu.vector_store %arg13[%100, %c0_30], %99 {strides = array<i32>} : memref<16x4xf32, #tpu.memory_space<vmem>>, vector<1x4xf32>,
    %c6_i32 = arith.constant 6 : i32
    %102 = arith.addi %17, %c6_i32 : i32
    %103 = arith.index_cast %102 : i32 to index
    %104 = memref.load %arg1[%103] : memref<48xi32, #tpu.memory_space<smem>>
    %105 = arith.addi %17, %c6_i32 : i32
    %106 = arith.index_cast %105 : i32 to index
    %107 = memref.load %arg2[%106] : memref<48xi32, #tpu.memory_space<smem>>
    %108 = arith.index_cast %104 : i32 to index
    %c0_31 = arith.constant 0 : index
    %109 = vector.load %arg9[%108, %c0_31] : memref<16x36xf32, #tpu.memory_space<vmem>>, vector<1x36xf32>
    %110 = arith.index_cast %c6_i32 : i32 to index
    %c0_32 = arith.constant 0 : index
    %111 = vector.load %arg12[%110, %c0_32] : memref<16x36xf32, #tpu.memory_space<vmem>>, vector<1x36xf32>
    tpu.vector_store %arg12[%110, %c0_32], %109 {strides = array<i32>} : memref<16x36xf32, #tpu.memory_space<vmem>>, vector<1x36xf32>,
    %112 = arith.index_cast %107 : i32 to index
    %c0_33 = arith.constant 0 : index
    %113 = vector.load %arg10[%112, %c0_33] : memref<16x4xf32, #tpu.memory_space<vmem>>, vector<1x4xf32>
    %114 = arith.index_cast %c6_i32 : i32 to index
    %c0_34 = arith.constant 0 : index
    %115 = vector.load %arg13[%114, %c0_34] : memref<16x4xf32, #tpu.memory_space<vmem>>, vector<1x4xf32>
    tpu.vector_store %arg13[%114, %c0_34], %113 {strides = array<i32>} : memref<16x4xf32, #tpu.memory_space<vmem>>, vector<1x4xf32>,
    %c7_i32 = arith.constant 7 : i32
    %116 = arith.addi %17, %c7_i32 : i32
    %117 = arith.index_cast %116 : i32 to index
    %118 = memref.load %arg1[%117] : memref<48xi32, #tpu.memory_space<smem>>
    %119 = arith.addi %17, %c7_i32 : i32
    %120 = arith.index_cast %119 : i32 to index
    %121 = memref.load %arg2[%120] : memref<48xi32, #tpu.memory_space<smem>>
    %122 = arith.index_cast %118 : i32 to index
    %c0_35 = arith.constant 0 : index
    %123 = vector.load %arg9[%122, %c0_35] : memref<16x36xf32, #tpu.memory_space<vmem>>, vector<1x36xf32>
    %124 = arith.index_cast %c7_i32 : i32 to index
    %c0_36 = arith.constant 0 : index
    %125 = vector.load %arg12[%124, %c0_36] : memref<16x36xf32, #tpu.memory_space<vmem>>, vector<1x36xf32>
    tpu.vector_store %arg12[%124, %c0_36], %123 {strides = array<i32>} : memref<16x36xf32, #tpu.memory_space<vmem>>, vector<1x36xf32>,
    %126 = arith.index_cast %121 : i32 to index
    %c0_37 = arith.constant 0 : index
    %127 = vector.load %arg10[%126, %c0_37] : memref<16x4xf32, #tpu.memory_space<vmem>>, vector<1x4xf32>
    %128 = arith.index_cast %c7_i32 : i32 to index
    %c0_38 = arith.constant 0 : index
    %129 = vector.load %arg13[%128, %c0_38] : memref<16x4xf32, #tpu.memory_space<vmem>>, vector<1x4xf32>
    tpu.vector_store %arg13[%128, %c0_38], %127 {strides = array<i32>} : memref<16x4xf32, #tpu.memory_space<vmem>>, vector<1x4xf32>,
    %c8_i32 = arith.constant 8 : i32
    %130 = arith.addi %17, %c8_i32 : i32
    %131 = arith.index_cast %130 : i32 to index
    %132 = memref.load %arg1[%131] : memref<48xi32, #tpu.memory_space<smem>>
    %133 = arith.addi %17, %c8_i32 : i32
    %134 = arith.index_cast %133 : i32 to index
    %135 = memref.load %arg2[%134] : memref<48xi32, #tpu.memory_space<smem>>
    %136 = arith.index_cast %132 : i32 to index
    %c0_39 = arith.constant 0 : index
    %137 = vector.load %arg9[%136, %c0_39] : memref<16x36xf32, #tpu.memory_space<vmem>>, vector<1x36xf32>
    %138 = arith.index_cast %c8_i32 : i32 to index
    %c0_40 = arith.constant 0 : index
    %139 = vector.load %arg12[%138, %c0_40] : memref<16x36xf32, #tpu.memory_space<vmem>>, vector<1x36xf32>
    tpu.vector_store %arg12[%138, %c0_40], %137 {strides = array<i32>} : memref<16x36xf32, #tpu.memory_space<vmem>>, vector<1x36xf32>,
    %140 = arith.index_cast %135 : i32 to index
    %c0_41 = arith.constant 0 : index
    %141 = vector.load %arg10[%140, %c0_41] : memref<16x4xf32, #tpu.memory_space<vmem>>, vector<1x4xf32>
    %142 = arith.index_cast %c8_i32 : i32 to index
    %c0_42 = arith.constant 0 : index
    %143 = vector.load %arg13[%142, %c0_42] : memref<16x4xf32, #tpu.memory_space<vmem>>, vector<1x4xf32>
    tpu.vector_store %arg13[%142, %c0_42], %141 {strides = array<i32>} : memref<16x4xf32, #tpu.memory_space<vmem>>, vector<1x4xf32>,
    %c9_i32 = arith.constant 9 : i32
    %144 = arith.addi %17, %c9_i32 : i32
    %145 = arith.index_cast %144 : i32 to index
    %146 = memref.load %arg1[%145] : memref<48xi32, #tpu.memory_space<smem>>
    %147 = arith.addi %17, %c9_i32 : i32
    %148 = arith.index_cast %147 : i32 to index
    %149 = memref.load %arg2[%148] : memref<48xi32, #tpu.memory_space<smem>>
    %150 = arith.index_cast %146 : i32 to index
    %c0_43 = arith.constant 0 : index
    %151 = vector.load %arg9[%150, %c0_43] : memref<16x36xf32, #tpu.memory_space<vmem>>, vector<1x36xf32>
    %152 = arith.index_cast %c9_i32 : i32 to index
    %c0_44 = arith.constant 0 : index
    %153 = vector.load %arg12[%152, %c0_44] : memref<16x36xf32, #tpu.memory_space<vmem>>, vector<1x36xf32>
    tpu.vector_store %arg12[%152, %c0_44], %151 {strides = array<i32>} : memref<16x36xf32, #tpu.memory_space<vmem>>, vector<1x36xf32>,
    %154 = arith.index_cast %149 : i32 to index
    %c0_45 = arith.constant 0 : index
    %155 = vector.load %arg10[%154, %c0_45] : memref<16x4xf32, #tpu.memory_space<vmem>>, vector<1x4xf32>
    %156 = arith.index_cast %c9_i32 : i32 to index
    %c0_46 = arith.constant 0 : index
    %157 = vector.load %arg13[%156, %c0_46] : memref<16x4xf32, #tpu.memory_space<vmem>>, vector<1x4xf32>
    tpu.vector_store %arg13[%156, %c0_46], %155 {strides = array<i32>} : memref<16x4xf32, #tpu.memory_space<vmem>>, vector<1x4xf32>,
    %c10_i32 = arith.constant 10 : i32
    %158 = arith.addi %17, %c10_i32 : i32
    %159 = arith.index_cast %158 : i32 to index
    %160 = memref.load %arg1[%159] : memref<48xi32, #tpu.memory_space<smem>>
    %161 = arith.addi %17, %c10_i32 : i32
    %162 = arith.index_cast %161 : i32 to index
    %163 = memref.load %arg2[%162] : memref<48xi32, #tpu.memory_space<smem>>
    %164 = arith.index_cast %160 : i32 to index
    %c0_47 = arith.constant 0 : index
    %165 = vector.load %arg9[%164, %c0_47] : memref<16x36xf32, #tpu.memory_space<vmem>>, vector<1x36xf32>
    %166 = arith.index_cast %c10_i32 : i32 to index
    %c0_48 = arith.constant 0 : index
    %167 = vector.load %arg12[%166, %c0_48] : memref<16x36xf32, #tpu.memory_space<vmem>>, vector<1x36xf32>
    tpu.vector_store %arg12[%166, %c0_48], %165 {strides = array<i32>} : memref<16x36xf32, #tpu.memory_space<vmem>>, vector<1x36xf32>,
    %168 = arith.index_cast %163 : i32 to index
    %c0_49 = arith.constant 0 : index
    %169 = vector.load %arg10[%168, %c0_49] : memref<16x4xf32, #tpu.memory_space<vmem>>, vector<1x4xf32>
    %170 = arith.index_cast %c10_i32 : i32 to index
    %c0_50 = arith.constant 0 : index
    %171 = vector.load %arg13[%170, %c0_50] : memref<16x4xf32, #tpu.memory_space<vmem>>, vector<1x4xf32>
    tpu.vector_store %arg13[%170, %c0_50], %169 {strides = array<i32>} : memref<16x4xf32, #tpu.memory_space<vmem>>, vector<1x4xf32>,
    %c11_i32 = arith.constant 11 : i32
    %172 = arith.addi %17, %c11_i32 : i32
    %173 = arith.index_cast %172 : i32 to index
    %174 = memref.load %arg1[%173] : memref<48xi32, #tpu.memory_space<smem>>
    %175 = arith.addi %17, %c11_i32 : i32
    %176 = arith.index_cast %175 : i32 to index
    %177 = memref.load %arg2[%176] : memref<48xi32, #tpu.memory_space<smem>>
    %178 = arith.index_cast %174 : i32 to index
    %c0_51 = arith.constant 0 : index
    %179 = vector.load %arg9[%178, %c0_51] : memref<16x36xf32, #tpu.memory_space<vmem>>, vector<1x36xf32>
    %180 = arith.index_cast %c11_i32 : i32 to index
    %c0_52 = arith.constant 0 : index
    %181 = vector.load %arg12[%180, %c0_52] : memref<16x36xf32, #tpu.memory_space<vmem>>, vector<1x36xf32>
    tpu.vector_store %arg12[%180, %c0_52], %179 {strides = array<i32>} : memref<16x36xf32, #tpu.memory_space<vmem>>, vector<1x36xf32>,
    %182 = arith.index_cast %177 : i32 to index
    %c0_53 = arith.constant 0 : index
    %183 = vector.load %arg10[%182, %c0_53] : memref<16x4xf32, #tpu.memory_space<vmem>>, vector<1x4xf32>
    %184 = arith.index_cast %c11_i32 : i32 to index
    %c0_54 = arith.constant 0 : index
    %185 = vector.load %arg13[%184, %c0_54] : memref<16x4xf32, #tpu.memory_space<vmem>>, vector<1x4xf32>
    tpu.vector_store %arg13[%184, %c0_54], %183 {strides = array<i32>} : memref<16x4xf32, #tpu.memory_space<vmem>>, vector<1x4xf32>,
    %c12_i32 = arith.constant 12 : i32
    %186 = arith.addi %17, %c12_i32 : i32
    %187 = arith.index_cast %186 : i32 to index
    %188 = memref.load %arg1[%187] : memref<48xi32, #tpu.memory_space<smem>>
    %189 = arith.addi %17, %c12_i32 : i32
    %190 = arith.index_cast %189 : i32 to index
    %191 = memref.load %arg2[%190] : memref<48xi32, #tpu.memory_space<smem>>
    %192 = arith.index_cast %188 : i32 to index
    %c0_55 = arith.constant 0 : index
    %193 = vector.load %arg9[%192, %c0_55] : memref<16x36xf32, #tpu.memory_space<vmem>>, vector<1x36xf32>
    %194 = arith.index_cast %c12_i32 : i32 to index
    %c0_56 = arith.constant 0 : index
    %195 = vector.load %arg12[%194, %c0_56] : memref<16x36xf32, #tpu.memory_space<vmem>>, vector<1x36xf32>
    tpu.vector_store %arg12[%194, %c0_56], %193 {strides = array<i32>} : memref<16x36xf32, #tpu.memory_space<vmem>>, vector<1x36xf32>,
    %196 = arith.index_cast %191 : i32 to index
    %c0_57 = arith.constant 0 : index
    %197 = vector.load %arg10[%196, %c0_57] : memref<16x4xf32, #tpu.memory_space<vmem>>, vector<1x4xf32>
    %198 = arith.index_cast %c12_i32 : i32 to index
    %c0_58 = arith.constant 0 : index
    %199 = vector.load %arg13[%198, %c0_58] : memref<16x4xf32, #tpu.memory_space<vmem>>, vector<1x4xf32>
    tpu.vector_store %arg13[%198, %c0_58], %197 {strides = array<i32>} : memref<16x4xf32, #tpu.memory_space<vmem>>, vector<1x4xf32>,
    %c13_i32 = arith.constant 13 : i32
    %200 = arith.addi %17, %c13_i32 : i32
    %201 = arith.index_cast %200 : i32 to index
    %202 = memref.load %arg1[%201] : memref<48xi32, #tpu.memory_space<smem>>
    %203 = arith.addi %17, %c13_i32 : i32
    %204 = arith.index_cast %203 : i32 to index
    %205 = memref.load %arg2[%204] : memref<48xi32, #tpu.memory_space<smem>>
    %206 = arith.index_cast %202 : i32 to index
    %c0_59 = arith.constant 0 : index
    %207 = vector.load %arg9[%206, %c0_59] : memref<16x36xf32, #tpu.memory_space<vmem>>, vector<1x36xf32>
    %208 = arith.index_cast %c13_i32 : i32 to index
    %c0_60 = arith.constant 0 : index
    %209 = vector.load %arg12[%208, %c0_60] : memref<16x36xf32, #tpu.memory_space<vmem>>, vector<1x36xf32>
    tpu.vector_store %arg12[%208, %c0_60], %207 {strides = array<i32>} : memref<16x36xf32, #tpu.memory_space<vmem>>, vector<1x36xf32>,
    %210 = arith.index_cast %205 : i32 to index
    %c0_61 = arith.constant 0 : index
    %211 = vector.load %arg10[%210, %c0_61] : memref<16x4xf32, #tpu.memory_space<vmem>>, vector<1x4xf32>
    %212 = arith.index_cast %c13_i32 : i32 to index
    %c0_62 = arith.constant 0 : index
    %213 = vector.load %arg13[%212, %c0_62] : memref<16x4xf32, #tpu.memory_space<vmem>>, vector<1x4xf32>
    tpu.vector_store %arg13[%212, %c0_62], %211 {strides = array<i32>} : memref<16x4xf32, #tpu.memory_space<vmem>>, vector<1x4xf32>,
    %c14_i32 = arith.constant 14 : i32
    %214 = arith.addi %17, %c14_i32 : i32
    %215 = arith.index_cast %214 : i32 to index
    %216 = memref.load %arg1[%215] : memref<48xi32, #tpu.memory_space<smem>>
    %217 = arith.addi %17, %c14_i32 : i32
    %218 = arith.index_cast %217 : i32 to index
    %219 = memref.load %arg2[%218] : memref<48xi32, #tpu.memory_space<smem>>
    %220 = arith.index_cast %216 : i32 to index
    %c0_63 = arith.constant 0 : index
    %221 = vector.load %arg9[%220, %c0_63] : memref<16x36xf32, #tpu.memory_space<vmem>>, vector<1x36xf32>
    %222 = arith.index_cast %c14_i32 : i32 to index
    %c0_64 = arith.constant 0 : index
    %223 = vector.load %arg12[%222, %c0_64] : memref<16x36xf32, #tpu.memory_space<vmem>>, vector<1x36xf32>
    tpu.vector_store %arg12[%222, %c0_64], %221 {strides = array<i32>} : memref<16x36xf32, #tpu.memory_space<vmem>>, vector<1x36xf32>,
    %224 = arith.index_cast %219 : i32 to index
    %c0_65 = arith.constant 0 : index
    %225 = vector.load %arg10[%224, %c0_65] : memref<16x4xf32, #tpu.memory_space<vmem>>, vector<1x4xf32>
    %226 = arith.index_cast %c14_i32 : i32 to index
    %c0_66 = arith.constant 0 : index
    %227 = vector.load %arg13[%226, %c0_66] : memref<16x4xf32, #tpu.memory_space<vmem>>, vector<1x4xf32>
    tpu.vector_store %arg13[%226, %c0_66], %225 {strides = array<i32>} : memref<16x4xf32, #tpu.memory_space<vmem>>, vector<1x4xf32>,
    %c15_i32 = arith.constant 15 : i32
    %228 = arith.addi %17, %c15_i32 : i32
    %229 = arith.index_cast %228 : i32 to index
    %230 = memref.load %arg1[%229] : memref<48xi32, #tpu.memory_space<smem>>
    %231 = arith.addi %17, %c15_i32 : i32
    %232 = arith.index_cast %231 : i32 to index
    %233 = memref.load %arg2[%232] : memref<48xi32, #tpu.memory_space<smem>>
    %234 = arith.index_cast %230 : i32 to index
    %c0_67 = arith.constant 0 : index
    %235 = vector.load %arg9[%234, %c0_67] : memref<16x36xf32, #tpu.memory_space<vmem>>, vector<1x36xf32>
    %236 = arith.index_cast %c15_i32 : i32 to index
    %c0_68 = arith.constant 0 : index
    %237 = vector.load %arg12[%236, %c0_68] : memref<16x36xf32, #tpu.memory_space<vmem>>, vector<1x36xf32>
    tpu.vector_store %arg12[%236, %c0_68], %235 {strides = array<i32>} : memref<16x36xf32, #tpu.memory_space<vmem>>, vector<1x36xf32>,
    %238 = arith.index_cast %233 : i32 to index
    %c0_69 = arith.constant 0 : index
    %239 = vector.load %arg10[%238, %c0_69] : memref<16x4xf32, #tpu.memory_space<vmem>>, vector<1x4xf32>
    %240 = arith.index_cast %c15_i32 : i32 to index
    %c0_70 = arith.constant 0 : index
    %241 = vector.load %arg13[%240, %c0_70] : memref<16x4xf32, #tpu.memory_space<vmem>>, vector<1x4xf32>
    tpu.vector_store %arg13[%240, %c0_70], %239 {strides = array<i32>} : memref<16x4xf32, #tpu.memory_space<vmem>>, vector<1x4xf32>,
    %c16_i32_71 = arith.constant 16 : i32
    %c0_72 = arith.constant 0 : index
    %c0_73 = arith.constant 0 : index
    %242 = vector.load %arg12[%c0_72, %c0_73] : memref<16x36xf32, #tpu.memory_space<vmem>>, vector<16x36xf32>
    %243 = vector.extract_strided_slice %242 {offsets = [0, 0], sizes = [16, 32], strides = [1, 1]} : vector<16x36xf32> to vector<16x32xf32>
    %244 = vector.extract_strided_slice %242 {offsets = [0, 32], sizes = [16, 4], strides = [1, 1]} : vector<16x36xf32> to vector<16x4xf32>
    %c0_74 = arith.constant 0 : index
    %c0_75 = arith.constant 0 : index
    %245 = vector.load %arg13[%c0_74, %c0_75] : memref<16x4xf32, #tpu.memory_space<vmem>>, vector<16x4xf32>
    %246 = arith.addf %244, %245 : vector<16x4xf32>
    %cst_76 = arith.constant 0.000000e+00 : f32
    %247 = vector.broadcast %cst_76 : f32 to vector<16x4xf32>
    %248 = arith.cmpf ogt, %246, %247 : vector<16x4xf32>
    %cst_77 = arith.constant 2.000000e-01 : f32
    %249 = vector.broadcast %cst_77 : f32 to vector<16x4xf32>
    %250 = arith.mulf %249, %246 : vector<16x4xf32>
    %251 = arith.select %248, %246, %250 : vector<16x4xi1>, vector<16x4xf32>
    %252 = vector.broadcast %16 : f32 to vector<16x4xf32>
    %253 = arith.subf %251, %252 : vector<16x4xf32>
    %254 = math.exp %253 : vector<16x4xf32>
    %255 = tpu.iota {dimensions = array<i32: 0>} : vector<16x1xi32>
    %256 = vector.broadcast %17 : i32 to vector<16x1xi32>
    %257 = arith.addi %255, %256 : vector<16x1xi32>
    %c48_i32 = arith.constant 48 : i32
    %258 = vector.broadcast %c48_i32 : i32 to vector<16x1xi32>
    %259 = arith.cmpi slt, %257, %258 : vector<16x1xi32>
    %cst_78 = arith.constant 0.000000e+00 : f32
    %260 = vector.shape_cast %259 : vector<16x1xi1> to vector<16x1xi1>
    %261 = vector.broadcast %260 : vector<16x1xi1> to vector<16x4xi1>
    %262 = vector.broadcast %cst_78 : f32 to vector<16x4xf32>
    %263 = arith.select %261, %254, %262 : vector<16x4xi1>, vector<16x4xf32>
    %264 = tpu.iota {dimensions = array<i32: 0>} : vector<4x32xi32>
    %265 = tpu.iota {dimensions = array<i32: 1>} : vector<4x32xi32>
    %c8_i32_79 = arith.constant 8 : i32
    %266 = vector.broadcast %c8_i32_79 : i32 to vector<4x32xi32>
    %267 = arith.muli %264, %266 : vector<4x32xi32>
    %268 = arith.cmpi sge, %265, %267 : vector<4x32xi32>
    %c1_i32_80 = arith.constant 1 : i32
    %269 = vector.broadcast %c1_i32_80 : i32 to vector<4x32xi32>
    %270 = arith.addi %264, %269 : vector<4x32xi32>
    %c8_i32_81 = arith.constant 8 : i32
    %271 = vector.broadcast %c8_i32_81 : i32 to vector<4x32xi32>
    %272 = arith.muli %270, %271 : vector<4x32xi32>
    %273 = arith.cmpi slt, %265, %272 : vector<4x32xi32>
    %274 = arith.andi %268, %273 : vector<4x32xi1>
    %275 = arith.extui %274 : vector<4x32xi1> to vector<4x32xi32>
    %276 = arith.sitofp %275 : vector<4x32xi32> to vector<4x32xf32>
    %cst_82 = arith.constant dense<0.000000e+00> : vector<16x32xf32>
    %277 = tpu.matmul %263, %276, %cst_82 {dimension_numbers = #tpu.dot_dimension_numbers<[1], [0], [0], [1], [0, 0, 1, 1], [], []>} : vector<16x4xf32>, vector<4x32xf32>, vector<16x32xf32> -> vector<16x32xf32>
    %278 = arith.mulf %243, %277 : vector<16x32xf32>
    %c0_83 = arith.constant 0 : index
    %c0_84 = arith.constant 0 : index
    %279 = vector.load %arg12[%c0_83, %c0_84] : memref<16x36xf32, #tpu.memory_space<vmem>>, vector<16x32xf32>
    tpu.vector_store %arg12[%c0_83, %c0_84], %278 {strides = array<i32>} : memref<16x36xf32, #tpu.memory_space<vmem>>, vector<16x32xf32>,
    %c0_85 = arith.constant 0 : index
    %c32_86 = arith.constant 32 : index
    %280 = vector.load %arg12[%c0_85, %c32_86] : memref<16x36xf32, #tpu.memory_space<vmem>>, vector<16x4xf32>
    tpu.vector_store %arg12[%c0_85, %c32_86], %263 {strides = array<i32>} : memref<16x36xf32, #tpu.memory_space<vmem>>, vector<16x4xf32>,
    %c0_i32_87 = arith.constant 0 : i32
    %281 = arith.addi %17, %c0_i32_87 : i32
    %282 = arith.index_cast %281 : i32 to index
    %283 = memref.load %arg2[%282] : memref<48xi32, #tpu.memory_space<smem>>
    %284 = arith.index_cast %283 : i32 to index
    %c0_88 = arith.constant 0 : index
    %285 = vector.load %arg11[%284, %c0_88] : memref<16x36xf32, #tpu.memory_space<vmem>>, vector<1x36xf32>
    %286 = arith.index_cast %c0_i32_87 : i32 to index
    %c0_89 = arith.constant 0 : index
    %287 = vector.load %arg12[%286, %c0_89] : memref<16x36xf32, #tpu.memory_space<vmem>>, vector<1x36xf32>
    %288 = arith.addf %285, %287 : vector<1x36xf32>
    %289 = arith.index_cast %283 : i32 to index
    %c0_90 = arith.constant 0 : index
    %290 = vector.load %arg11[%289, %c0_90] : memref<16x36xf32, #tpu.memory_space<vmem>>, vector<1x36xf32>
    tpu.vector_store %arg11[%289, %c0_90], %288 {strides = array<i32>} : memref<16x36xf32, #tpu.memory_space<vmem>>, vector<1x36xf32>,
    %c1_i32_91 = arith.constant 1 : i32
    %291 = arith.addi %17, %c1_i32_91 : i32
    %292 = arith.index_cast %291 : i32 to index
    %293 = memref.load %arg2[%292] : memref<48xi32, #tpu.memory_space<smem>>
    %294 = arith.index_cast %293 : i32 to index
    %c0_92 = arith.constant 0 : index
    %295 = vector.load %arg11[%294, %c0_92] : memref<16x36xf32, #tpu.memory_space<vmem>>, vector<1x36xf32>
    %296 = arith.index_cast %c1_i32_91 : i32 to index
    %c0_93 = arith.constant 0 : index
    %297 = vector.load %arg12[%296, %c0_93] : memref<16x36xf32, #tpu.memory_space<vmem>>, vector<1x36xf32>
    %298 = arith.addf %295, %297 : vector<1x36xf32>
    %299 = arith.index_cast %293 : i32 to index
    %c0_94 = arith.constant 0 : index
    %300 = vector.load %arg11[%299, %c0_94] : memref<16x36xf32, #tpu.memory_space<vmem>>, vector<1x36xf32>
    tpu.vector_store %arg11[%299, %c0_94], %298 {strides = array<i32>} : memref<16x36xf32, #tpu.memory_space<vmem>>, vector<1x36xf32>,
    %c2_i32_95 = arith.constant 2 : i32
    %301 = arith.addi %17, %c2_i32_95 : i32
    %302 = arith.index_cast %301 : i32 to index
    %303 = memref.load %arg2[%302] : memref<48xi32, #tpu.memory_space<smem>>
    %304 = arith.index_cast %303 : i32 to index
    %c0_96 = arith.constant 0 : index
    %305 = vector.load %arg11[%304, %c0_96] : memref<16x36xf32, #tpu.memory_space<vmem>>, vector<1x36xf32>
    %306 = arith.index_cast %c2_i32_95 : i32 to index
    %c0_97 = arith.constant 0 : index
    %307 = vector.load %arg12[%306, %c0_97] : memref<16x36xf32, #tpu.memory_space<vmem>>, vector<1x36xf32>
    %308 = arith.addf %305, %307 : vector<1x36xf32>
    %309 = arith.index_cast %303 : i32 to index
    %c0_98 = arith.constant 0 : index
    %310 = vector.load %arg11[%309, %c0_98] : memref<16x36xf32, #tpu.memory_space<vmem>>, vector<1x36xf32>
    tpu.vector_store %arg11[%309, %c0_98], %308 {strides = array<i32>} : memref<16x36xf32, #tpu.memory_space<vmem>>, vector<1x36xf32>,
    %c3_i32_99 = arith.constant 3 : i32
    %311 = arith.addi %17, %c3_i32_99 : i32
    %312 = arith.index_cast %311 : i32 to index
    %313 = memref.load %arg2[%312] : memref<48xi32, #tpu.memory_space<smem>>
    %314 = arith.index_cast %313 : i32 to index
    %c0_100 = arith.constant 0 : index
    %315 = vector.load %arg11[%314, %c0_100] : memref<16x36xf32, #tpu.memory_space<vmem>>, vector<1x36xf32>
    %316 = arith.index_cast %c3_i32_99 : i32 to index
    %c0_101 = arith.constant 0 : index
    %317 = vector.load %arg12[%316, %c0_101] : memref<16x36xf32, #tpu.memory_space<vmem>>, vector<1x36xf32>
    %318 = arith.addf %315, %317 : vector<1x36xf32>
    %319 = arith.index_cast %313 : i32 to index
    %c0_102 = arith.constant 0 : index
    %320 = vector.load %arg11[%319, %c0_102] : memref<16x36xf32, #tpu.memory_space<vmem>>, vector<1x36xf32>
    tpu.vector_store %arg11[%319, %c0_102], %318 {strides = array<i32>} : memref<16x36xf32, #tpu.memory_space<vmem>>, vector<1x36xf32>,
    %c4_i32_103 = arith.constant 4 : i32
    %321 = arith.addi %17, %c4_i32_103 : i32
    %322 = arith.index_cast %321 : i32 to index
    %323 = memref.load %arg2[%322] : memref<48xi32, #tpu.memory_space<smem>>
    %324 = arith.index_cast %323 : i32 to index
    %c0_104 = arith.constant 0 : index
    %325 = vector.load %arg11[%324, %c0_104] : memref<16x36xf32, #tpu.memory_space<vmem>>, vector<1x36xf32>
    %326 = arith.index_cast %c4_i32_103 : i32 to index
    %c0_105 = arith.constant 0 : index
    %327 = vector.load %arg12[%326, %c0_105] : memref<16x36xf32, #tpu.memory_space<vmem>>, vector<1x36xf32>
    %328 = arith.addf %325, %327 : vector<1x36xf32>
    %329 = arith.index_cast %323 : i32 to index
    %c0_106 = arith.constant 0 : index
    %330 = vector.load %arg11[%329, %c0_106] : memref<16x36xf32, #tpu.memory_space<vmem>>, vector<1x36xf32>
    tpu.vector_store %arg11[%329, %c0_106], %328 {strides = array<i32>} : memref<16x36xf32, #tpu.memory_space<vmem>>, vector<1x36xf32>,
    %c5_i32_107 = arith.constant 5 : i32
    %331 = arith.addi %17, %c5_i32_107 : i32
    %332 = arith.index_cast %331 : i32 to index
    %333 = memref.load %arg2[%332] : memref<48xi32, #tpu.memory_space<smem>>
    %334 = arith.index_cast %333 : i32 to index
    %c0_108 = arith.constant 0 : index
    %335 = vector.load %arg11[%334, %c0_108] : memref<16x36xf32, #tpu.memory_space<vmem>>, vector<1x36xf32>
    %336 = arith.index_cast %c5_i32_107 : i32 to index
    %c0_109 = arith.constant 0 : index
    %337 = vector.load %arg12[%336, %c0_109] : memref<16x36xf32, #tpu.memory_space<vmem>>, vector<1x36xf32>
    %338 = arith.addf %335, %337 : vector<1x36xf32>
    %339 = arith.index_cast %333 : i32 to index
    %c0_110 = arith.constant 0 : index
    %340 = vector.load %arg11[%339, %c0_110] : memref<16x36xf32, #tpu.memory_space<vmem>>, vector<1x36xf32>
    tpu.vector_store %arg11[%339, %c0_110], %338 {strides = array<i32>} : memref<16x36xf32, #tpu.memory_space<vmem>>, vector<1x36xf32>,
    %c6_i32_111 = arith.constant 6 : i32
    %341 = arith.addi %17, %c6_i32_111 : i32
    %342 = arith.index_cast %341 : i32 to index
    %343 = memref.load %arg2[%342] : memref<48xi32, #tpu.memory_space<smem>>
    %344 = arith.index_cast %343 : i32 to index
    %c0_112 = arith.constant 0 : index
    %345 = vector.load %arg11[%344, %c0_112] : memref<16x36xf32, #tpu.memory_space<vmem>>, vector<1x36xf32>
    %346 = arith.index_cast %c6_i32_111 : i32 to index
    %c0_113 = arith.constant 0 : index
    %347 = vector.load %arg12[%346, %c0_113] : memref<16x36xf32, #tpu.memory_space<vmem>>, vector<1x36xf32>
    %348 = arith.addf %345, %347 : vector<1x36xf32>
    %349 = arith.index_cast %343 : i32 to index
    %c0_114 = arith.constant 0 : index
    %350 = vector.load %arg11[%349, %c0_114] : memref<16x36xf32, #tpu.memory_space<vmem>>, vector<1x36xf32>
    tpu.vector_store %arg11[%349, %c0_114], %348 {strides = array<i32>} : memref<16x36xf32, #tpu.memory_space<vmem>>, vector<1x36xf32>,
    %c7_i32_115 = arith.constant 7 : i32
    %351 = arith.addi %17, %c7_i32_115 : i32
    %352 = arith.index_cast %351 : i32 to index
    %353 = memref.load %arg2[%352] : memref<48xi32, #tpu.memory_space<smem>>
    %354 = arith.index_cast %353 : i32 to index
    %c0_116 = arith.constant 0 : index
    %355 = vector.load %arg11[%354, %c0_116] : memref<16x36xf32, #tpu.memory_space<vmem>>, vector<1x36xf32>
    %356 = arith.index_cast %c7_i32_115 : i32 to index
    %c0_117 = arith.constant 0 : index
    %357 = vector.load %arg12[%356, %c0_117] : memref<16x36xf32, #tpu.memory_space<vmem>>, vector<1x36xf32>
    %358 = arith.addf %355, %357 : vector<1x36xf32>
    %359 = arith.index_cast %353 : i32 to index
    %c0_118 = arith.constant 0 : index
    %360 = vector.load %arg11[%359, %c0_118] : memref<16x36xf32, #tpu.memory_space<vmem>>, vector<1x36xf32>
    tpu.vector_store %arg11[%359, %c0_118], %358 {strides = array<i32>} : memref<16x36xf32, #tpu.memory_space<vmem>>, vector<1x36xf32>,
    %c8_i32_119 = arith.constant 8 : i32
    %361 = arith.addi %17, %c8_i32_119 : i32
    %362 = arith.index_cast %361 : i32 to index
    %363 = memref.load %arg2[%362] : memref<48xi32, #tpu.memory_space<smem>>
    %364 = arith.index_cast %363 : i32 to index
    %c0_120 = arith.constant 0 : index
    %365 = vector.load %arg11[%364, %c0_120] : memref<16x36xf32, #tpu.memory_space<vmem>>, vector<1x36xf32>
    %366 = arith.index_cast %c8_i32_119 : i32 to index
    %c0_121 = arith.constant 0 : index
    %367 = vector.load %arg12[%366, %c0_121] : memref<16x36xf32, #tpu.memory_space<vmem>>, vector<1x36xf32>
    %368 = arith.addf %365, %367 : vector<1x36xf32>
    %369 = arith.index_cast %363 : i32 to index
    %c0_122 = arith.constant 0 : index
    %370 = vector.load %arg11[%369, %c0_122] : memref<16x36xf32, #tpu.memory_space<vmem>>, vector<1x36xf32>
    tpu.vector_store %arg11[%369, %c0_122], %368 {strides = array<i32>} : memref<16x36xf32, #tpu.memory_space<vmem>>, vector<1x36xf32>,
    %c9_i32_123 = arith.constant 9 : i32
    %371 = arith.addi %17, %c9_i32_123 : i32
    %372 = arith.index_cast %371 : i32 to index
    %373 = memref.load %arg2[%372] : memref<48xi32, #tpu.memory_space<smem>>
    %374 = arith.index_cast %373 : i32 to index
    %c0_124 = arith.constant 0 : index
    %375 = vector.load %arg11[%374, %c0_124] : memref<16x36xf32, #tpu.memory_space<vmem>>, vector<1x36xf32>
    %376 = arith.index_cast %c9_i32_123 : i32 to index
    %c0_125 = arith.constant 0 : index
    %377 = vector.load %arg12[%376, %c0_125] : memref<16x36xf32, #tpu.memory_space<vmem>>, vector<1x36xf32>
    %378 = arith.addf %375, %377 : vector<1x36xf32>
    %379 = arith.index_cast %373 : i32 to index
    %c0_126 = arith.constant 0 : index
    %380 = vector.load %arg11[%379, %c0_126] : memref<16x36xf32, #tpu.memory_space<vmem>>, vector<1x36xf32>
    tpu.vector_store %arg11[%379, %c0_126], %378 {strides = array<i32>} : memref<16x36xf32, #tpu.memory_space<vmem>>, vector<1x36xf32>,
    %c10_i32_127 = arith.constant 10 : i32
    %381 = arith.addi %17, %c10_i32_127 : i32
    %382 = arith.index_cast %381 : i32 to index
    %383 = memref.load %arg2[%382] : memref<48xi32, #tpu.memory_space<smem>>
    %384 = arith.index_cast %383 : i32 to index
    %c0_128 = arith.constant 0 : index
    %385 = vector.load %arg11[%384, %c0_128] : memref<16x36xf32, #tpu.memory_space<vmem>>, vector<1x36xf32>
    %386 = arith.index_cast %c10_i32_127 : i32 to index
    %c0_129 = arith.constant 0 : index
    %387 = vector.load %arg12[%386, %c0_129] : memref<16x36xf32, #tpu.memory_space<vmem>>, vector<1x36xf32>
    %388 = arith.addf %385, %387 : vector<1x36xf32>
    %389 = arith.index_cast %383 : i32 to index
    %c0_130 = arith.constant 0 : index
    %390 = vector.load %arg11[%389, %c0_130] : memref<16x36xf32, #tpu.memory_space<vmem>>, vector<1x36xf32>
    tpu.vector_store %arg11[%389, %c0_130], %388 {strides = array<i32>} : memref<16x36xf32, #tpu.memory_space<vmem>>, vector<1x36xf32>,
    %c11_i32_131 = arith.constant 11 : i32
    %391 = arith.addi %17, %c11_i32_131 : i32
    %392 = arith.index_cast %391 : i32 to index
    %393 = memref.load %arg2[%392] : memref<48xi32, #tpu.memory_space<smem>>
    %394 = arith.index_cast %393 : i32 to index
    %c0_132 = arith.constant 0 : index
    %395 = vector.load %arg11[%394, %c0_132] : memref<16x36xf32, #tpu.memory_space<vmem>>, vector<1x36xf32>
    %396 = arith.index_cast %c11_i32_131 : i32 to index
    %c0_133 = arith.constant 0 : index
    %397 = vector.load %arg12[%396, %c0_133] : memref<16x36xf32, #tpu.memory_space<vmem>>, vector<1x36xf32>
    %398 = arith.addf %395, %397 : vector<1x36xf32>
    %399 = arith.index_cast %393 : i32 to index
    %c0_134 = arith.constant 0 : index
    %400 = vector.load %arg11[%399, %c0_134] : memref<16x36xf32, #tpu.memory_space<vmem>>, vector<1x36xf32>
    tpu.vector_store %arg11[%399, %c0_134], %398 {strides = array<i32>} : memref<16x36xf32, #tpu.memory_space<vmem>>, vector<1x36xf32>,
    %c12_i32_135 = arith.constant 12 : i32
    %401 = arith.addi %17, %c12_i32_135 : i32
    %402 = arith.index_cast %401 : i32 to index
    %403 = memref.load %arg2[%402] : memref<48xi32, #tpu.memory_space<smem>>
    %404 = arith.index_cast %403 : i32 to index
    %c0_136 = arith.constant 0 : index
    %405 = vector.load %arg11[%404, %c0_136] : memref<16x36xf32, #tpu.memory_space<vmem>>, vector<1x36xf32>
    %406 = arith.index_cast %c12_i32_135 : i32 to index
    %c0_137 = arith.constant 0 : index
    %407 = vector.load %arg12[%406, %c0_137] : memref<16x36xf32, #tpu.memory_space<vmem>>, vector<1x36xf32>
    %408 = arith.addf %405, %407 : vector<1x36xf32>
    %409 = arith.index_cast %403 : i32 to index
    %c0_138 = arith.constant 0 : index
    %410 = vector.load %arg11[%409, %c0_138] : memref<16x36xf32, #tpu.memory_space<vmem>>, vector<1x36xf32>
    tpu.vector_store %arg11[%409, %c0_138], %408 {strides = array<i32>} : memref<16x36xf32, #tpu.memory_space<vmem>>, vector<1x36xf32>,
    %c13_i32_139 = arith.constant 13 : i32
    %411 = arith.addi %17, %c13_i32_139 : i32
    %412 = arith.index_cast %411 : i32 to index
    %413 = memref.load %arg2[%412] : memref<48xi32, #tpu.memory_space<smem>>
    %414 = arith.index_cast %413 : i32 to index
    %c0_140 = arith.constant 0 : index
    %415 = vector.load %arg11[%414, %c0_140] : memref<16x36xf32, #tpu.memory_space<vmem>>, vector<1x36xf32>
    %416 = arith.index_cast %c13_i32_139 : i32 to index
    %c0_141 = arith.constant 0 : index
    %417 = vector.load %arg12[%416, %c0_141] : memref<16x36xf32, #tpu.memory_space<vmem>>, vector<1x36xf32>
    %418 = arith.addf %415, %417 : vector<1x36xf32>
    %419 = arith.index_cast %413 : i32 to index
    %c0_142 = arith.constant 0 : index
    %420 = vector.load %arg11[%419, %c0_142] : memref<16x36xf32, #tpu.memory_space<vmem>>, vector<1x36xf32>
    tpu.vector_store %arg11[%419, %c0_142], %418 {strides = array<i32>} : memref<16x36xf32, #tpu.memory_space<vmem>>, vector<1x36xf32>,
    %c14_i32_143 = arith.constant 14 : i32
    %421 = arith.addi %17, %c14_i32_143 : i32
    %422 = arith.index_cast %421 : i32 to index
    %423 = memref.load %arg2[%422] : memref<48xi32, #tpu.memory_space<smem>>
    %424 = arith.index_cast %423 : i32 to index
    %c0_144 = arith.constant 0 : index
    %425 = vector.load %arg11[%424, %c0_144] : memref<16x36xf32, #tpu.memory_space<vmem>>, vector<1x36xf32>
    %426 = arith.index_cast %c14_i32_143 : i32 to index
    %c0_145 = arith.constant 0 : index
    %427 = vector.load %arg12[%426, %c0_145] : memref<16x36xf32, #tpu.memory_space<vmem>>, vector<1x36xf32>
    %428 = arith.addf %425, %427 : vector<1x36xf32>
    %429 = arith.index_cast %423 : i32 to index
    %c0_146 = arith.constant 0 : index
    %430 = vector.load %arg11[%429, %c0_146] : memref<16x36xf32, #tpu.memory_space<vmem>>, vector<1x36xf32>
    tpu.vector_store %arg11[%429, %c0_146], %428 {strides = array<i32>} : memref<16x36xf32, #tpu.memory_space<vmem>>, vector<1x36xf32>,
    %c15_i32_147 = arith.constant 15 : i32
    %431 = arith.addi %17, %c15_i32_147 : i32
    %432 = arith.index_cast %431 : i32 to index
    %433 = memref.load %arg2[%432] : memref<48xi32, #tpu.memory_space<smem>>
    %434 = arith.index_cast %433 : i32 to index
    %c0_148 = arith.constant 0 : index
    %435 = vector.load %arg11[%434, %c0_148] : memref<16x36xf32, #tpu.memory_space<vmem>>, vector<1x36xf32>
    %436 = arith.index_cast %c15_i32_147 : i32 to index
    %c0_149 = arith.constant 0 : index
    %437 = vector.load %arg12[%436, %c0_149] : memref<16x36xf32, #tpu.memory_space<vmem>>, vector<1x36xf32>
    %438 = arith.addf %435, %437 : vector<1x36xf32>
    %439 = arith.index_cast %433 : i32 to index
    %c0_150 = arith.constant 0 : index
    %440 = vector.load %arg11[%439, %c0_150] : memref<16x36xf32, #tpu.memory_space<vmem>>, vector<1x36xf32>
    tpu.vector_store %arg11[%439, %c0_150], %438 {strides = array<i32>} : memref<16x36xf32, #tpu.memory_space<vmem>>, vector<1x36xf32>,
    %c16_i32_151 = arith.constant 16 : i32
    %c2_i32_152 = arith.constant 2 : i32
    %441 = arith.cmpi eq, %arg0, %c2_i32_152 : i32
    %442 = arith.extui %441 : i1 to i32
    %c0_i32_153 = arith.constant 0 : i32
    %443 = arith.cmpi ne, %442, %c0_i32_153 : i32
    scf.if %443 {
      %c0_154 = arith.constant 0 : index
      %c0_155 = arith.constant 0 : index
      %444 = vector.load %arg11[%c0_154, %c0_155] : memref<16x36xf32, #tpu.memory_space<vmem>>, vector<16x36xf32>
      %445 = vector.extract_strided_slice %444 {offsets = [0, 0], sizes = [16, 32], strides = [1, 1]} : vector<16x36xf32> to vector<16x32xf32>
      %446 = vector.extract_strided_slice %444 {offsets = [0, 32], sizes = [16, 4], strides = [1, 1]} : vector<16x36xf32> to vector<16x4xf32>
      %cst_156 = arith.constant 1.000000e-16 : f32
      %447 = vector.broadcast %cst_156 : f32 to vector<16x4xf32>
      %448 = arith.addf %446, %447 : vector<16x4xf32>
      %cst_157 = arith.constant 1.000000e+00 : f32
      %449 = vector.broadcast %cst_157 : f32 to vector<16x4xf32>
      %450 = arith.divf %449, %448 : vector<16x4xf32>
      %cst_158 = arith.constant dense<0.000000e+00> : vector<16x32xf32>
      %451 = tpu.matmul %450, %276, %cst_158 {dimension_numbers = #tpu.dot_dimension_numbers<[1], [0], [0], [1], [0, 0, 1, 1], [], []>} : vector<16x4xf32>, vector<4x32xf32>, vector<16x32xf32> -> vector<16x32xf32>
      %452 = arith.mulf %445, %451 : vector<16x32xf32>
      %c0_159 = arith.constant 0 : index
      %c0_160 = arith.constant 0 : index
      %453 = vector.load %arg3[%c0_159, %c0_160] : memref<16x16xf32, #tpu.memory_space<vmem>>, vector<16x16xf32>
      %c0_161 = arith.constant 0 : index
      %c0_162 = arith.constant 0 : index
      %454 = vector.load %arg7[%c0_161, %c0_162] : memref<16x32xf32, #tpu.memory_space<vmem>>, vector<16x32xf32>
      %cst_163 = arith.constant dense<0.000000e+00> : vector<16x32xf32>
      %455 = tpu.matmul %453, %454, %cst_163 {dimension_numbers = #tpu.dot_dimension_numbers<[1], [0], [0], [1], [0, 0, 1, 1], [], []>} : vector<16x16xf32>, vector<16x32xf32>, vector<16x32xf32> -> vector<16x32xf32>
      %456 = arith.addf %452, %455 : vector<16x32xf32>
      %c0_164 = arith.constant 0 : index
      %c0_165 = arith.constant 0 : index
      %457 = vector.load %arg6[%c0_164, %c0_165] : memref<1x32xf32, #tpu.memory_space<vmem>>, vector<1x32xf32>
      %458 = vector.broadcast %457 : vector<1x32xf32> to vector<16x32xf32>
      %459 = arith.addf %456, %458 : vector<16x32xf32>
      %cst_166 = arith.constant 0.000000e+00 : f32
      %460 = vector.broadcast %cst_166 : f32 to vector<16x32xf32>
      %461 = arith.cmpf ogt, %459, %460 : vector<16x32xf32>
      %cst_167 = arith.constant 0.000000e+00 : f32
      %462 = vector.broadcast %cst_167 : f32 to vector<16x32xf32>
      %463 = arith.minimumf %459, %462 : vector<16x32xf32>
      %464 = math.exp %463 : vector<16x32xf32>
      %cst_168 = arith.constant 1.000000e+00 : f32
      %465 = vector.broadcast %cst_168 : f32 to vector<16x32xf32>
      %466 = arith.subf %464, %465 : vector<16x32xf32>
      %467 = arith.select %461, %459, %466 : vector<16x32xi1>, vector<16x32xf32>
      %c0_169 = arith.constant 0 : index
      %c0_170 = arith.constant 0 : index
      %468 = vector.load %arg8[%c0_169, %c0_170] : memref<16x32xf32, #tpu.memory_space<vmem>>, vector<16x32xf32>
      tpu.vector_store %arg8[%c0_169, %c0_170], %467 {strides = array<i32>} : memref<16x32xf32, #tpu.memory_space<vmem>>, vector<16x32xf32>,
    } else {
    }
    return
  }
  func.func @transform_0(%arg0: i32, %arg1: memref<48xi32, #tpu.memory_space<smem>>, %arg2: memref<48xi32, #tpu.memory_space<smem>>) -> (i32, i32) {
    %c0_i32 = arith.constant 0 : i32
    %c0_i32_0 = arith.constant 0 : i32
    %c0_i32_1 = arith.constant 0 : i32
    return %c0_i32, %c0_i32_0 : i32, i32
  }
  func.func @transform_1(%arg0: i32, %arg1: memref<48xi32, #tpu.memory_space<smem>>, %arg2: memref<48xi32, #tpu.memory_space<smem>>) -> (i32, i32) {
    %c0_i32 = arith.constant 0 : i32
    %c0_i32_0 = arith.constant 0 : i32
    %c0_i32_1 = arith.constant 0 : i32
    return %c0_i32, %c0_i32_0 : i32, i32
  }
  func.func @transform_2(%arg0: i32, %arg1: memref<48xi32, #tpu.memory_space<smem>>, %arg2: memref<48xi32, #tpu.memory_space<smem>>) -> (i32, i32) {
    %c0_i32 = arith.constant 0 : i32
    %c0_i32_0 = arith.constant 0 : i32
    %c0_i32_1 = arith.constant 0 : i32
    return %c0_i32, %c0_i32_0 : i32, i32
  }
  func.func @transform_3(%arg0: i32, %arg1: memref<48xi32, #tpu.memory_space<smem>>, %arg2: memref<48xi32, #tpu.memory_space<smem>>) -> (i32, i32) {
    %c0_i32 = arith.constant 0 : i32
    %c0_i32_0 = arith.constant 0 : i32
    %c0_i32_1 = arith.constant 0 : i32
    return %c0_i32, %c0_i32_0 : i32, i32
  }
  func.func @transform_4(%arg0: i32, %arg1: memref<48xi32, #tpu.memory_space<smem>>, %arg2: memref<48xi32, #tpu.memory_space<smem>>) -> (i32, i32) {
    %c0_i32 = arith.constant 0 : i32
    %c0_i32_0 = arith.constant 0 : i32
    %c0_i32_1 = arith.constant 0 : i32
    return %c0_i32, %c0_i32_0 : i32, i32
  }
  func.func @transform_5(%arg0: i32, %arg1: memref<48xi32, #tpu.memory_space<smem>>, %arg2: memref<48xi32, #tpu.memory_space<smem>>) -> (i32, i32) {
    %c0_i32 = arith.constant 0 : i32
    %c0_i32_0 = arith.constant 0 : i32
    %c0_i32_1 = arith.constant 0 : i32
    return %c0_i32, %c0_i32_0 : i32, i32
  }
}

</mosaic_0001>

<bundles_post_ra>
// kernel: tpu_custom_call.1
= control target key start
LH: loop header
LB: loop body
LE: loop exit
PB: predicated region body
PF: predicated region fallthrough
CT: control target
= control target key end

     0   :  { %s1681_s0 = inlined_call_operand.vmem [shape: s32[48], index: 0, kind: input, shape index: {}]   ;;  %s1682_s2 = inlined_call_operand.vmem [shape: f32[16,16], index: 2, kind: input, shape index: {}]   ;;  %s1683_s3 = inlined_call_operand.vmem [shape: f32[16,32], index: 3, kind: input, shape index: {}]   ;;  %s1684_s4 = inlined_call_operand.vmem [shape: f32[32,8], index: 4, kind: input, shape index: {}]   ;;  %s1685_s5 = inlined_call_operand.hbm [shape: f32[1,32], index: 5, kind: input, shape index: {}]   ;;  %s1686_s6 = inlined_call_operand.vmem [shape: f32[16,32], index: 6, kind: input, shape index: {}]   ;;  %s1687_s7 = inlined_call_operand.hbm [shape: f32[16,32], index: 7, kind: output, shape index: {}]   ;;  %s1688_s1 = inlined_call_operand.hbm [shape: s32[48], index: 1, kind: input, shape index: {}]  }
   0x1   :  { %1695 = sst [smem:[#allocation19_spill]] %s1682_s2  ;;  %s12_s26 = sshll.u32 %s1681_s0, 4  ;;  %s13_s26 = int_to_ptr.vmem [resolvable:$true] %s12_s26 }
   0x2   :  { %1696 = sst [smem:[#allocation20_spill]] %s1683_s3  ;;  %s1280_s27 = scalar_lea.vmem %s13_s26, 16 }
   0x3   :  { %1697 = sst [smem:[#allocation21_spill]] %s1684_s4  ;;  %p1281_p0 = scmp.ne.s32.totalorder %s13_s26, %s1280_s27 }
   0x4   :  { %1698 = sst [smem:[#allocation22_spill]] %s1685_s5  ;;  %p1285_p1 = scmp.lt.s32.totalorder %s13_s26, %s13_s26 }
   0x5   :  { %1699 = sst [smem:[#allocation23_spill]] %s1686_s6  ;;  %p1286_p2 = scmp.lt.s32.totalorder %s1280_s27, %s1280_s27 }
   0x6   :  { %1700 = sst [smem:[#allocation24_spill]] %s1687_s7 }
   0x7   :  { %p1287_p3 = por %p1286_p2, %p1285_p1 }
   0x9   :  { %p1288_p4 = pnand %p1287_p3, %p1281_p0 }
   0xb   :  { %1291 = shalt.err (!%p1288_p4)  }
   0xc   :  { %s1368_s28 = smov [#allocation8]   ;;  %s1369_s29 = smov [#allocation9]  }
   0xd   :  { %15 = dma.vmem_to_smem %s13_s26, 16, %s1368_s28, [#allocation7] }
   0xe   :  { %17 = dma.hbm_to_smem %s1688_s1, 16, %s1369_s29, [#allocation7] }
   0xf   :  { %1354 = dma.done.wait [#allocation7], 32 }
  0x10   :  { %1355 = vsyncadd [#allocation7], 4294967264 }
  0x11   :  { %19 = sfence }
  0x12   :  { %20 = vsyncpa [#allocation11], 0 }
  0x13   :  { %21 = vsyncpa [#allocation12], 0  ;;  %s1427_s0 = smov 0  }
  0x14 LB: > { %1701 = sst [smem:[#allocation17_spill]] %s1366_s0  ;;  %s1433_s9 = sadd.s32 4294967295, %s1366_s0   ;;  %s1366_s0 = sphi %s1427_s0, %s27_s0  }
  0x15   : > { %1702 = sst [smem:[#allocation18_spill]] %s1433_s9  ;;  %p1145_p5 = scmp.ge.s32.totalorder %s1366_s0, 1 }
  0x16   : > { %p158_p6 = scmp.lt.s32.totalorder %s1366_s0, 4  ;;  %p1146_p7 = scmp.ne.s32.totalorder %s1433_s9, 0 }
  0x17   : > { %p1243_p9 = scmp.eq.s32.totalorder %s1433_s9, 0  ;;  %s1370_s10 = smov [#allocation10]  }
  0x18   : > { %p1438_p8 = pnand %p1145_p5, %p158_p6  ;;  %s180_s11 = sshll.u32 %s1370_s10, 4  ;;  %s181_s11 = int_to_ptr.vmem [resolvable:$true] %s180_s11 }
  0x19   : > { %s1311_s12 = scalar_lea.vmem %s181_s11, 16  ;;  %s1318_s13 = scalar_lea.vmem %s181_s11, 32 }
  0x1a   : > { %p1239_p10 = pneg %p1438_p8  ;;  %p1312_p13 = scmp.ne.s32.totalorder %s181_s11, %s1311_s12 }
  0x1b   : > { %p1319_p2 = scmp.lt.s32.totalorder %s181_s11, %s181_s11  ;;  %p1320_p3 = scmp.lt.s32.totalorder %s1318_s13, %s1311_s12 }
  0x1c   : > { %p1240_p11 = pnand %p1243_p9, %p1239_p10 }
  0x1d   : > { %p1321_p4 = por %p1320_p3, %p1319_p2 }
  0x1e   : > { %p1302_p12 = pneg %p1240_p11 }
  0x20   : > { %p1314_p0 = pnand %p1312_p13, %p1302_p12 }
  0x22   : > { %p1315_p1 = pneg %p1314_p0 }
  0x24   : > { %p1322_p5 = pnand %p1321_p4, %p1315_p1 }
  0x26   : > { %1325 = shalt.err (!%p1322_p5)
}
  0x27   : > { %s1704_s5 = sld [smem:[#allocation22_spill]] }
  0x29   : > { %196 = sbr.rel (%p1438_p8) target bundleno = 1674 (0x68a), region = 40 }
  0x2d   : > { %1242 = dma.hbm_to_vmem [thread:$0]  (!%p1240_p11), %s1704_s5, 16, %s181_s11, [#allocation11]  }
  0x2e   : > { %1357 = dma.done.wait (%p1243_p9), [#allocation11], 16  }
  0x2f   : > { %1359 = vsyncadd (%p1243_p9), [#allocation11], 4294967280  ;;  %217 = sbr.rel (%p1146_p7) target bundleno = 570 (0x23a), region = 48  ;;  %s1705_s3 = sld [smem:[#allocation20_spill]] (!%p1146_p7) }
  0x30   : > { %s1706_s2 = sld [smem:[#allocation19_spill]] (!%p1146_p7)  ;;  %s1372_s1 = smov (!%p1146_p7), 124  }
  0x31   : > { %s1707_s4 = sld [smem:[#allocation21_spill]] (!%p1146_p7)  ;;  %s1373_s10 = smov (!%p1146_p7), 32  }
  0x34   : > { %vm222_vm0 = vcmask 130048   ;;  %vm308_vm1 = vcmask 261120   ;;  %vm412_vm2 = vcmask 293888   ;;  %v1371_v10 = vmov 0.0  }
  0x35   : > { %v221_v0 = vld [vmem:[%s1705_s3 + $0x8] sm:$0xff]  ;;  %v220_v1 = vld [vmem:[%s1705_s3] sm:$0xff]  ;;  %413 = vst.msk [vmem:[#allocation4] sm:$0xff] %vm412_vm2, %v1371_v10  ;;  %414 = vst.msk [vmem:[#allocation4 + $0x8] sm:$0xff] %vm412_vm2, %v1371_v10  ;;  %vm409_vm3 = vcmask 31744   ;;  %vm400_vm4 = vcmask 294144  }
  0x36   : > { %v218_v2 = vld [vmem:[%s1706_s2] sm:$0xff]  ;;  %1192 = vmatprep.subr.mxu0 %v221_v0  ;;  %v219_v5 = vld [vmem:[%s1706_s2 + $0x8] sm:$0xff] }
  0x37   : > { %1196 = vmatprep.mubr.msk.f32.mxu0 %vm222_vm0, %v218_v2  ;;  %v307_v3 = vld [vmem:[%s1707_s4 + $0x18] sm:$0xff]  ;;  %v306_v4 = vld [vmem:[%s1707_s4 + $0x10] sm:$0xff]  ;;  %1193 = vmatpush3.msra.mxu0 %v221_v0  ;;  %v305_v6 = vld [vmem:[%s1707_s4 + $0x8] sm:$0xff] }
  0x38   : > { %1199 = vmatprep.subr.mxu1 %v307_v3  ;;  %1194 = vmatprep.subr.mxu0 %v220_v1  ;;  %v304_v7 = vld [vmem:[%s1707_s4] sm:$0xff] }
  0x39   : > { %1200 = vmatpush3.msra.mxu1 %v307_v3  ;;  %1195 = vmatpush3.msra.mxu0 %v220_v1 }
  0x3a   : > { %1201 = vmatprep.subr.mxu1 %v306_v4  ;;  %1197 = vmatmul.mubr.msk.f32.vlgmr.msra.gmra.mxu0 %vm222_vm0, %v219_v5 }
  0x3b   : > { %1202 = vmatpush3.msra.mxu1 %v306_v4 }
  0x3c   : > { %1203 = vmatprep.subr.mxu1 %v305_v6 }
  0x3d   : > { %1204 = vmatpush3.msra.mxu1 %v305_v6 }
  0x3e   : > { %1205 = vmatprep.subr.mxu1 %v304_v7 }
  0x3f   : > { %1206 = vmatpush3.msra.mxu1 %v304_v7 }
  0xfa   : > { %v1198_v8 = vpop.f32.mrf.mxu0 }
  0xfb   : > { %391 = vst.msk [vmem:[#allocation2 + $0x8] sm:$0xff] %vm308_vm1, %v1198_v8 }
  0xfc   : > { %v295_v9 = vpop.f32.mrf.mxu0 }
  0xfd   : > { %390 = vst.msk [vmem:[#allocation2] sm:$0xff] %vm308_vm1, %v295_v9  ;;  %1207 = vmatprep.mubr.msk.f32.mxu1 %vm308_vm1, %v295_v9 }
  0xfe   : > { %1208 = vmatmul.mubr.msk.f32.vlgmr.msra.gmra.mxu1 %vm308_vm1, %v1198_v8 }
 0x1be   : > { %v1209_v11 = vpop.f32.mrf.mxu1 }
 0x1c0   : > { %v381_v12 = vpop.f32.mrf.mxu1 }
 0x1c1   : > { %403 = vrot.lane.b32.xlu1 %v381_v12, %s1372_s1  ;;  %394 = vrot.lane.b32.xlu0 %v381_v12, %s1373_s10 }
 0x1c5   : > { %405 = vrot.lane.b32.xlu1 %v1209_v11, %s1372_s1  ;;  %396 = vrot.lane.b32.xlu0 %v1209_v11, %s1373_s10 }
 0x233   : > { %v404_v13 = vpop.permute.xlu1 %403  ;;  %v395_v14 = vpop.permute.xlu0 %394 }
 0x234   : > { %410 = vst.msk [vmem:[#allocation3] sm:$0xff] %vm409_vm3, %v404_v13 }
 0x235   : > { %401 = vst.msk [vmem:[#allocation2] sm:$0xff] %vm400_vm4, %v395_v14 }
 0x237   : > { %v406_v15 = vpop.permute.xlu1 %405  ;;  %v397_v16 = vpop.permute.xlu0 %396 }
 0x238   : > { %411 = vst.msk [vmem:[#allocation3 + $0x8] sm:$0xff] %vm409_vm3, %v406_v15 }
 0x239   : > { %402 = vst.msk [vmem:[#allocation2 + $0x8] sm:$0xff] %vm400_vm4, %v397_v16 }
 0x23a PF: > { %vm417_vm5 = vcmask 294144   ;;  %vm432_vm6 = vcmask 31744   ;;  %s1483_s11 = sshll.u32 %s1433_s9, 4  ;;  %vm458_vm7 = vcmask 24576   ;;  %vm454_vm8 = vcmask 286720  }
 0x23b   : > { %v430_v19 = vld [vmem:[#allocation3] sm:$0xff]  ;;  %s451_s12 = sld [smem:[#allocation9 + %s1483_s11]]  ;;  %s1491_s13 = sadd.s32 1, %s1483_s11  ;;  %v622_v61 = vlaneseq  ;;  %vm656_vm11 = vcmask 1043456   ;;  %v1375_v3 = vmov 0.0   ;;  %vm737_vm1 = vcmask 261120  }
 0x23c   : > { %v415_v17 = vld [vmem:[#allocation2] sm:$0xff]  ;;  %v433_v23 = vsel %vm432_vm6, %v430_v19, -inf  ;;  %s1494_s14 = sadd.s32 2, %s1483_s11  ;;  %s462_s15 = sld [smem:[#allocation9 + %s1491_s13]] }
 0x23d   : > { %v418_v20 = vsel %vm417_vm5, %v415_v17, -inf  ;;  %s1498_s16 = sadd.s32 3, %s1483_s11  ;;  %s471_s17 = sld [smem:[#allocation9 + %s1494_s14]]  ;;  %v623_v62 = vshrl.u32 %v622_v61, 7  ;;  %v637_v63 = vand.u32 127, %v622_v61 }
 0x23e   : > { %s1502_s18 = sadd.s32 4, %s1483_s11  ;;  %s480_s19 = sld [smem:[#allocation9 + %s1498_s16]] }
 0x23f   : > { %v431_v22 = vld [vmem:[#allocation3 + $0x8] sm:$0xff]  ;;  %s1506_s20 = sadd.s32 5, %s1483_s11  ;;  %s489_s21 = sld [smem:[#allocation9 + %s1502_s18]]  ;;  %v638_v0 = vmul.u32 8, %v623_v62  ;;  %v640_v1 = vadd.s32 1, %v623_v62 }
 0x240   : > { %v416_v18 = vld [vmem:[#allocation2 + $0x8] sm:$0xff]  ;;  %v434_v25 = vsel %vm432_vm6, %v431_v22, -inf  ;;  %s1510_s22 = sadd.s32 6, %s1483_s11  ;;  %s498_s23 = sld [smem:[#allocation9 + %s1506_s20]] }
 0x241   : > { %v419_v21 = vsel %vm417_vm5, %v416_v18, -inf  ;;  %v435_v26 = vmax.f32 %v433_v23, %v434_v25  ;;  %s456_s24 = scalar_lea.vmem [#allocation3], %s451_s12  ;;  %s507_s25 = sld [smem:[#allocation9 + %s1510_s22]]  ;;  %vm639_vm9 = vcmp.ge.s32.totalorder %v637_v63, %v638_v0  ;;  %v641_v2 = vmul.u32 8, %v640_v1 }
 0x242   : > { %v420_v24 = vmax.f32 %v418_v20, %v419_v21  ;;  %v457_v27 = vld [vmem:[%s456_s24] sm:$0x1]  ;;  %s1515_s26 = sadd.s32 7, %s1483_s11  ;;  %s466_s28 = scalar_lea.vmem [#allocation3], %s462_s15 }
 0x243   : > { %459 = vst.msk [vmem:[#allocation6] sm:$0x1] %vm458_vm7, %v457_v27  ;;  %s516_s27 = sld [smem:[#allocation9 + %s1515_s26]]  ;;  %v467_v28 = vld [vmem:[%s466_s28] sm:$0x1]  ;;  %s475_s29 = scalar_lea.vmem [#allocation3], %s471_s17  ;;  %vm642_vm10 = vcmp.lt.s32.totalorder %v637_v63, %v641_v2 }
 0x244   : > { %421 = vmax.xlane.f32.xlu0 %v420_v24  ;;  %468 = vst.msk [vmem:[#allocation6 + $0x1] sm:$0x1] %vm458_vm7, %v467_v28  ;;  %v476_v29 = vld [vmem:[%s475_s29] sm:$0x1]  ;;  %s484_s30 = scalar_lea.vmem [#allocation3], %s480_s19  ;;  %s1526_s15 = sadd.s32 8, %s1483_s11  ;;  %vm643_vm12 = vmand %vm639_vm9, %vm642_vm10 }
 0x245   : > { %477 = vst.msk [vmem:[#allocation6 + $0x2] sm:$0x1] %vm458_vm7, %v476_v29  ;;  %v485_v30 = vld [vmem:[%s484_s30] sm:$0x1]  ;;  %s493_s8 = scalar_lea.vmem [#allocation3], %s489_s21  ;;  %s525_s17 = sld [smem:[#allocation9 + %s1526_s15]] }
 0x246   : > { %486 = vst.msk [vmem:[#allocation6 + $0x3] sm:$0x1] %vm458_vm7, %v485_v30  ;;  %v494_v31 = vld [vmem:[%s493_s8] sm:$0x1]  ;;  %s502_s1 = scalar_lea.vmem [#allocation3], %s498_s23  ;;  %s1531_s19 = sadd.s32 9, %s1483_s11 }
 0x247   : > { %495 = vst.msk [vmem:[#allocation6 + $0x4] sm:$0x1] %vm458_vm7, %v494_v31  ;;  %v503_v32 = vld [vmem:[%s502_s1] sm:$0x1]  ;;  %s511_s10 = scalar_lea.vmem [#allocation3], %s507_s25  ;;  %s534_s21 = sld [smem:[#allocation9 + %s1531_s19]] }
 0x248   : > { %436 = vmax.xlane.f32.xlu0 %v435_v26  ;;  %504 = vst.msk [vmem:[#allocation6 + $0x5] sm:$0x1] %vm458_vm7, %v503_v32  ;;  %v512_v33 = vld [vmem:[%s511_s10] sm:$0x1]  ;;  %s1535_s23 = sadd.s32 10, %s1483_s11  ;;  %s1539_s25 = sadd.s32 11, %s1483_s11 }
 0x249   : > { %513 = vst.msk [vmem:[#allocation6 + $0x6] sm:$0x1] %vm458_vm7, %v512_v33  ;;  %s520_s12 = scalar_lea.vmem [#allocation3], %s516_s27  ;;  %s543_s24 = sld [smem:[#allocation9 + %s1535_s23]]  ;;  %v1600_v4 = vsel %vm643_vm12, 1.0, %v1375_v3 }
 0x24a   : > { %v521_v34 = vld [vmem:[%s520_s12] sm:$0x1]  ;;  %s552_s27 = sld [smem:[#allocation9 + %s1539_s25]]  ;;  %s1689_s28 = smov 32   ;;  %1210 = vmatprep.subr.msk.mxu0 %vm656_vm11, %v1600_v4 }
 0x24b   : > { %522 = vst.msk [vmem:[#allocation6 + $0x7] sm:$0x1] %vm458_vm7, %v521_v34  ;;  %s529_s29 = scalar_lea.vmem [#allocation3], %s525_s17  ;;  %s1544_s30 = sadd.s32 12, %s1483_s11  ;;  %1211 = vmatpush3.msk.msra.mxu0 %vm656_vm11, %v1600_v4  ;;  %v624_v34 = vadd.s32 8, %v623_v62 }
 0x24c   : > { %v530_v36 = vld [vmem:[%s529_s29] sm:$0x1]  ;;  %s1547_s8 = sadd.s32 13, %s1483_s11  ;;  %s561_s1 = sld [smem:[#allocation9 + %s1544_s30]] }
 0x24d   : > { %531 = vst.msk [vmem:[#allocation6 + $0x8] sm:$0x1] %vm458_vm7, %v530_v36  ;;  %s538_s10 = scalar_lea.vmem [#allocation3], %s534_s21  ;;  %s570_s12 = sld [smem:[#allocation9 + %s1547_s8]] }
 0x24e   : > { %v539_v37 = vld [vmem:[%s538_s10] sm:$0x1]  ;;  %s1553_s3 = sadd.s32 14, %s1483_s11  ;;  %s1558_s29 = sadd.s32 15, %s1483_s11 }
 0x24f   : > { %540 = vst.msk [vmem:[#allocation6 + $0x9] sm:$0x1] %vm458_vm7, %v539_v37  ;;  %s547_s17 = scalar_lea.vmem [#allocation3], %s543_s24  ;;  %s588_s4 = sld [smem:[#allocation9 + %s1558_s29]] }
 0x250   : > { %v548_v38 = vld [vmem:[%s547_s17] sm:$0x1]  ;;  %s556_s5 = scalar_lea.vmem [#allocation3], %s552_s27  ;;  %s1708_s27 = smov 32  }
 0x251   : > { %549 = vst.msk [vmem:[#allocation6 + $0xa] sm:$0x1] %vm458_vm7, %v548_v38  ;;  %v557_v39 = vld [vmem:[%s556_s5] sm:$0x1]  ;;  %s479_s17 = sld [smem:[#allocation8 + %s1498_s16]] }
 0x252   : > { %v597_v35 = vld [vmem:[#allocation6] sm:$0xff]  ;;  %558 = vst.msk [vmem:[#allocation6 + $0xb] sm:$0x1] %vm458_vm7, %v557_v39  ;;  %s565_s21 = scalar_lea.vmem [#allocation3], %s561_s1  ;;  %s461_s1 = sld [smem:[#allocation8 + %s1491_s13]] }
 0x253   : > { %601 = vrot.lane.b32.xlu1 %v597_v35, %s1689_s28  ;;  %s579_s28 = sld [smem:[#allocation9 + %s1553_s3]]  ;;  %v566_v40 = vld [vmem:[%s565_s21] sm:$0x1]  ;;  %s574_s24 = scalar_lea.vmem [#allocation3], %s570_s12  ;;  %v625_v35 = vstv %s1483_s11 }
 0x254   : > { %567 = vst.msk [vmem:[#allocation6 + $0xc] sm:$0x1] %vm458_vm7, %v566_v40  ;;  %v575_v41 = vld [vmem:[%s574_s24] sm:$0x1]  ;;  %s470_s12 = sld [smem:[#allocation8 + %s1494_s14]]  ;;  %v626_v36 = vadd.s32 %v625_v35, %v623_v62  ;;  %v627_v37 = vadd.s32 %v625_v35, %v624_v34 }
 0x255   : > { %576 = vst.msk [vmem:[#allocation6 + $0xd] sm:$0x1] %vm458_vm7, %v575_v41  ;;  %s592_s5 = scalar_lea.vmem [#allocation3], %s588_s4  ;;  %s488_s21 = sld [smem:[#allocation8 + %s1502_s18]] }
 0x256   : > { %v593_v43 = vld [vmem:[%s592_s5] sm:$0x1]  ;;  %s497_s24 = sld [smem:[#allocation8 + %s1506_s20]]  ;;  %vm628_vm15 = vcmp.lt.s32.totalorder %v626_v36, 48  ;;  %vm629_vm0 = vcmp.lt.s32.totalorder %v627_v37, 48 }
 0x257   : > { %594 = vst.msk [vmem:[#allocation6 + $0xf] sm:$0x1] %vm458_vm7, %v593_v43  ;;  %s506_s0 = sld [smem:[#allocation8 + %s1510_s22]] }
 0x258   : > { %s450_s4 = sld [smem:[#allocation8 + %s1483_s11]] }
 0x259   : > { %s583_s10 = scalar_lea.vmem [#allocation3], %s579_s28  ;;  %s515_s28 = sld [smem:[#allocation8 + %s1515_s26]] }
 0x25a   : > { %v584_v42 = vld [vmem:[%s583_s10] sm:$0x1]  ;;  %s463_s10 = scalar_lea.vmem [#allocation2], %s461_s1  ;;  %s472_s5 = scalar_lea.vmem [#allocation2], %s470_s12 }
 0x25b   : > { %585 = vst.msk [vmem:[#allocation6 + $0xe] sm:$0x1] %vm458_vm7, %v584_v42  ;;  %v464_v45 = vld [vmem:[%s463_s10] sm:$0x1]  ;;  %s524_s7 = sld [smem:[#allocation8 + %s1526_s15]]  ;;  %s490_s6 = scalar_lea.vmem [#allocation2], %s488_s21 }
 0x25c   : > { %465 = vst.msk [vmem:[#allocation5 + $0x1] sm:$0x1] %vm454_vm8, %v464_v45  ;;  %v473_v46 = vld [vmem:[%s472_s5] sm:$0x1]  ;;  %s533_s2 = sld [smem:[#allocation8 + %s1531_s19]]  ;;  %s499_s10 = scalar_lea.vmem [#allocation2], %s497_s24 }
 0x25d   : > { %474 = vst.msk [vmem:[#allocation5 + $0x2] sm:$0x1] %vm454_vm8, %v473_v46  ;;  %v491_v48 = vld [vmem:[%s490_s6] sm:$0x1]  ;;  %s542_s1 = sld [smem:[#allocation8 + %s1535_s23]]  ;;  %s508_s5 = scalar_lea.vmem [#allocation2], %s506_s0 }
 0x25e   : > { %492 = vst.msk [vmem:[#allocation5 + $0x4] sm:$0x1] %vm454_vm8, %v491_v48  ;;  %v500_v49 = vld [vmem:[%s499_s10] sm:$0x1]  ;;  %s551_s12 = sld [smem:[#allocation8 + %s1539_s25]]  ;;  %s452_s6 = scalar_lea.vmem [#allocation2], %s450_s4 }
 0x25f   : > { %501 = vst.msk [vmem:[#allocation5 + $0x5] sm:$0x1] %vm454_vm8, %v500_v49  ;;  %v509_v50 = vld [vmem:[%s508_s5] sm:$0x1]  ;;  %s569_s9 = sld [smem:[#allocation8 + %s1547_s8]] }
 0x260   : > { %510 = vst.msk [vmem:[#allocation5 + $0x6] sm:$0x1] %vm454_vm8, %v509_v50  ;;  %v453_v52 = vld [vmem:[%s452_s6] sm:$0x1]  ;;  %s578_s21 = sld [smem:[#allocation8 + %s1553_s3]]  ;;  %s1376_s6 = smov 96  }
 0x261   : > { %455 = vst.msk [vmem:[#allocation5] sm:$0x1] %vm454_vm8, %v453_v52  ;;  %s526_s24 = scalar_lea.vmem [#allocation2], %s524_s7  ;;  %s587_s10 = sld [smem:[#allocation8 + %s1558_s29]] }
 0x262   : > { %v598_v44 = vld [vmem:[#allocation6 + $0x8] sm:$0xff]  ;;  %v527_v53 = vld [vmem:[%s526_s24] sm:$0x1]  ;;  %s535_s0 = scalar_lea.vmem [#allocation2], %s533_s2 }
 0x263   : > { %603 = vrot.lane.b32.xlu1 %v598_v44, %s1708_s27  ;;  %s481_s27 = scalar_lea.vmem [#allocation2], %s479_s17  ;;  %s560_s17 = sld [smem:[#allocation8 + %s1544_s30]]  ;;  %528 = vst.msk [vmem:[#allocation5 + $0x8] sm:$0x1] %vm454_vm8, %v527_v53  ;;  %v536_v54 = vld [vmem:[%s535_s0] sm:$0x1] }
 0x264   : > { %v482_v47 = vld [vmem:[%s481_s27] sm:$0x1]  ;;  %s517_s27 = scalar_lea.vmem [#allocation2], %s515_s28  ;;  %537 = vst.msk [vmem:[#allocation5 + $0x9] sm:$0x1] %vm454_vm8, %v536_v54  ;;  %s544_s5 = scalar_lea.vmem [#allocation2], %s542_s1 }
 0x265   : > { %483 = vst.msk [vmem:[#allocation5 + $0x3] sm:$0x1] %vm454_vm8, %v482_v47  ;;  %v518_v51 = vld [vmem:[%s517_s27] sm:$0x1]  ;;  %s553_s28 = scalar_lea.vmem [#allocation2], %s551_s12  ;;  %s571_s7 = scalar_lea.vmem [#allocation2], %s569_s9 }
 0x266   : > { %519 = vst.msk [vmem:[#allocation5 + $0x7] sm:$0x1] %vm454_vm8, %v518_v51  ;;  %v545_v55 = vld [vmem:[%s544_s5] sm:$0x1]  ;;  %s580_s2 = scalar_lea.vmem [#allocation2], %s578_s21  ;;  %s742_s21 = sld [smem:[#allocation9 + %s1483_s11]] }
 0x267   : > { %546 = vst.msk [vmem:[#allocation5 + $0xa] sm:$0x1] %vm454_vm8, %v545_v55  ;;  %v554_v56 = vld [vmem:[%s553_s28] sm:$0x1]  ;;  %s589_s1 = scalar_lea.vmem [#allocation2], %s587_s10  ;;  %s748_s10 = sld [smem:[#allocation9 + %s1491_s13]] }
 0x268   : > { %555 = vst.msk [vmem:[#allocation5 + $0xb] sm:$0x1] %vm454_vm8, %v554_v56  ;;  %v572_v58 = vld [vmem:[%s571_s7] sm:$0x1]  ;;  %s754_s11 = sld [smem:[#allocation9 + %s1494_s14]] }
 0x269   : > { %s562_s4 = scalar_lea.vmem [#allocation2], %s560_s17  ;;  %573 = vst.msk [vmem:[#allocation5 + $0xd] sm:$0x1] %vm454_vm8, %v572_v58  ;;  %v581_v59 = vld [vmem:[%s580_s2] sm:$0x1]  ;;  %s760_s5 = sld [smem:[#allocation9 + %s1498_s16]] }
 0x26a   : > { %v563_v57 = vld [vmem:[%s562_s4] sm:$0x1]  ;;  %582 = vst.msk [vmem:[#allocation5 + $0xe] sm:$0x1] %vm454_vm8, %v581_v59  ;;  %s766_s13 = sld [smem:[#allocation9 + %s1502_s18]] }
 0x26b   : > { %564 = vst.msk [vmem:[#allocation5 + $0xc] sm:$0x1] %vm454_vm8, %v563_v57  ;;  %v590_v60 = vld [vmem:[%s589_s1] sm:$0x1]  ;;  %s772_s14 = sld [smem:[#allocation9 + %s1506_s20]] }
 0x26c   : > { %591 = vst.msk [vmem:[#allocation5 + $0xf] sm:$0x1] %vm454_vm8, %v590_v60  ;;  %s743_s24 = scalar_lea.vmem [#allocation4], %s742_s21  ;;  %s778_s16 = sld [smem:[#allocation9 + %s1510_s22]] }
 0x26d   : > { %v595_v22 = vld [vmem:[#allocation5] sm:$0xff]  ;;  %v744_v48 = vld [vmem:[%s743_s24] sm:$0x1]  ;;  %s749_s0 = scalar_lea.vmem [#allocation4], %s748_s10  ;;  %s784_s18 = sld [smem:[#allocation9 + %s1515_s26]] }
 0x26e   : > { %s755_s28 = scalar_lea.vmem [#allocation4], %s754_s11  ;;  %s790_s20 = sld [smem:[#allocation9 + %s1526_s15]] }
 0x26f   : > { %s761_s4 = scalar_lea.vmem [#allocation4], %s760_s5  ;;  %s796_s22 = sld [smem:[#allocation9 + %s1531_s19]] }
 0x270   : > { %s767_s7 = scalar_lea.vmem [#allocation4], %s766_s13  ;;  %s802_s26 = sld [smem:[#allocation9 + %s1535_s23]] }
 0x271   : > { %s773_s2 = scalar_lea.vmem [#allocation4], %s772_s14  ;;  %s808_s15 = sld [smem:[#allocation9 + %s1539_s25]] }
 0x272   : > { %s779_s1 = scalar_lea.vmem [#allocation4], %s778_s16  ;;  %s814_s19 = sld [smem:[#allocation9 + %s1544_s30]] }
 0x273   : > { %v596_v20 = vld [vmem:[#allocation5 + $0x8] sm:$0xff]  ;;  %s820_s23 = sld [smem:[#allocation9 + %s1547_s8]] }
 0x274   : > { %s826_s25 = sld [smem:[#allocation9 + %s1553_s3]] }
 0x275   : > { %s832_s30 = sld [smem:[#allocation9 + %s1558_s29]] }
 0x276   : > { %s1709_s3 = sld [smem:[#allocation18_spill]] }
 0x278   : > { %s815_s21 = scalar_lea.vmem [#allocation4], %s814_s19 }
 0x27a   : > { %s827_s10 = scalar_lea.vmem [#allocation4], %s826_s25 }
 0x27b   : > { %s833_s8 = scalar_lea.vmem [#allocation4], %s832_s30 }
 0x27c   : > { %p1159_p7 = scmp.ne.s32.totalorder %s1709_s3, 2 }
 0x2c5   : > { %v602_v19 = vpop.permute.xlu1 %601 }
 0x2c6   : > { %v607_v24 = vadd.f32 %v602_v19, %v595_v22 }
 0x2c8   : > { %v611_v26 = vmul.f32 0.2, %v607_v24  ;;  %vm609_vm14 = vcmp.gt.f32.partialorder %v607_v24, 0.0 }
 0x2ca   : > { %v613_v28 = vsel %vm609_vm14, %v607_v24, %v611_v26 }
 0x2cd   : > { %v422_v5 = vpop.xlane.xlu0 %421 }
 0x2ce   : > { %v423_v6 = vrot.slane %v422_v5, 4 }
 0x2d0   : > { %v424_v7 = vmax.f32 %v422_v5, %v423_v6 }
 0x2d1   : > { %v437_v8 = vpop.xlane.xlu0 %436 }
 0x2d2   : > { %v425_v9 = vrot.slane %v424_v7, 2  ;;  %v438_v10 = vrot.slane %v437_v8, 4 }
 0x2d4   : > { %v439_v11 = vmax.f32 %v437_v8, %v438_v10  ;;  %v426_v12 = vmax.f32 %v424_v7, %v425_v9 }
 0x2d5   : > { %v604_v21 = vpop.permute.xlu1 %603 }
 0x2d6   : > { %v440_v13 = vrot.slane %v439_v11, 2  ;;  %v427_v14 = vrot.slane %v426_v12, 1  ;;  %v608_v23 = vadd.f32 %v604_v21, %v596_v20 }
 0x2d8   : > { %v428_v15 = vmax.f32 %v426_v12, %v427_v14  ;;  %v441_v16 = vmax.f32 %v439_v11, %v440_v13  ;;  %v612_v25 = vmul.f32 0.2, %v608_v23  ;;  %vm610_vm13 = vcmp.gt.f32.partialorder %v608_v23, 0.0 }
 0x2da   : > { %1227 = vpush %v428_v15  ;;  %v442_v17 = vrot.slane %v441_v16, 1  ;;  %v614_v27 = vsel %vm610_vm13, %v608_v23, %v612_v25 }
 0x2dc   : > { %v443_v18 = vmax.f32 %v441_v16, %v442_v17 }
 0x2de   : > { %1229 = vpush %v443_v18 }
 0x30b   : > { %s1228_s9 = spop %1227 }
 0x30f   : > { %s1230_s12 = spop %1229 }
 0x310   : > { %s445_s17 = sadd.f32 %s1230_s12, %s1228_s9  ;;  %s785_s9 = scalar_lea.vmem [#allocation4], %s784_s18 }
 0x311   : > { %s791_s12 = scalar_lea.vmem [#allocation4], %s790_s20  ;;  %s1377_s18 = smov (!%p1159_p7), 96  }
 0x312   : > { %p446_p6 = scmp.gt.f32.partialorder %s445_s17, 0.0  ;;  %s447_s27 = smul.f32 0.2, %s445_s17 }
 0x314   : > { %s1717_s17 = smov (!%p446_p6, %s445_s17), %s447_s27  ;;  %s803_s27 = scalar_lea.vmem [#allocation4], %s802_s26 }
 0x315   : > { %v615_v29 = vstv %s1717_s17  ;;  %s797_s17 = scalar_lea.vmem [#allocation4], %s796_s22 }
 0x316   : > { %v616_v30 = vsub.f32 %v613_v28, %v615_v29  ;;  %v617_v31 = vsub.f32 %v614_v27, %v615_v29 }
 0x318   : > { %v618_v32 = vmul.f32 1.442695, %v616_v30  ;;  %v620_v33 = vmul.f32 1.442695, %v617_v31 }
 0x31a   : > { %1268 = vpow2.f32 %v618_v32 }
 0x31b   : > { %1270 = vpow2.f32 %v620_v33 }
 0x327   : > { %v1269_v38 = vpop.eup %1268 }
 0x328   : > { %v1271_v39 = vpop.eup %1270  ;;  %v634_v40 = vsel %vm628_vm15, %v1269_v38, 0.0 }
 0x329   : > { %v635_v41 = vsel %vm629_vm0, %v1271_v39, 0.0  ;;  %648 = vrot.lane.b32.xlu0 %v634_v40, %s1376_s6 }
 0x32a   : > { %650 = vrot.lane.b32.xlu1 %v635_v41, %s1376_s6  ;;  %s809_s6 = scalar_lea.vmem [#allocation4], %s808_s15 }
 0x39b   : > { %v649_v42 = vpop.permute.xlu0 %648 }
 0x39c   : > { %v651_v43 = vpop.permute.xlu1 %650  ;;  %1212 = vmatprep.mubr.msk.f32.mxu0 %vm432_vm6, %v649_v42 }
 0x39d   : > { %1213 = vmatmul.mubr.msk.f32.vlgmr.msra.gmra.mxu0 %vm432_vm6, %v651_v43 }
 0x45d   : > { %v1214_v44 = vpop.f32.mrf.mxu0 }
 0x45e   : > { %v736_v45 = vmul.f32 %v1214_v44, %v596_v20 }
 0x45f   : > { %v726_v46 = vpop.f32.mrf.mxu0 }
 0x460   : > { %739 = vst.msk [vmem:[#allocation5 + $0x8] sm:$0xff] %vm737_vm1, %v736_v45  ;;  %v735_v47 = vmul.f32 %v726_v46, %v595_v22 }
 0x461   : > { %741 = vst.msk [vmem:[#allocation5 + $0x8] sm:$0xff] %vm417_vm5, %v635_v41 }
 0x462   : > { %738 = vst.msk [vmem:[#allocation5] sm:$0xff] %vm737_vm1, %v735_v47 }
 0x463   : > { %740 = vst.msk [vmem:[#allocation5] sm:$0xff] %vm417_vm5, %v634_v40 }
 0x468   : > { %v793_v9 = vld [vmem:[#allocation5 + $0x8] sm:$0x1]  ;;  %v799_v12 = vld [vmem:[#allocation5 + $0x9] sm:$0x1]  ;;  %v805_v15 = vld [vmem:[#allocation5 + $0xa] sm:$0x1] }
 0x469   : > { %v811_v18 = vld [vmem:[#allocation5 + $0xb] sm:$0x1]  ;;  %v817_v21 = vld [vmem:[#allocation5 + $0xc] sm:$0x1]  ;;  %v823_v24 = vld [vmem:[#allocation5 + $0xd] sm:$0x1] }
 0x46a   : > { %v745_v49 = vld [vmem:[#allocation5] sm:$0x1]  ;;  %v751_v52 = vld [vmem:[#allocation5 + $0x1] sm:$0x1]  ;;  %v757_v55 = vld [vmem:[#allocation5 + $0x2] sm:$0x1] }
 0x46b   : > { %v746_v50 = vadd.f32 %v745_v49, %v744_v48  ;;  %v763_v58 = vld [vmem:[#allocation5 + $0x3] sm:$0x1]  ;;  %v769_v61 = vld [vmem:[#allocation5 + $0x4] sm:$0x1]  ;;  %v775_v0 = vld [vmem:[#allocation5 + $0x5] sm:$0x1] }
 0x46c   : > { %v781_v3 = vld [vmem:[#allocation5 + $0x6] sm:$0x1]  ;;  %v787_v7 = vld [vmem:[#allocation5 + $0x7] sm:$0x1]  ;;  %v829_v27 = vld [vmem:[#allocation5 + $0xe] sm:$0x1] }
 0x46d   : > { %747 = vst.msk [vmem:[%s743_s24] sm:$0x1] %vm454_vm8, %v746_v50  ;;  %s821_s24 = scalar_lea.vmem [#allocation4], %s820_s23  ;;  %v835_v30 = vld [vmem:[#allocation5 + $0xf] sm:$0x1] }
 0x474   : > { %v750_v51 = vld [vmem:[%s749_s0] sm:$0x1] }
 0x475   : > { %v752_v53 = vadd.f32 %v751_v52, %v750_v51 }
 0x477   : > { %753 = vst.msk [vmem:[%s749_s0] sm:$0x1] %vm454_vm8, %v752_v53  ;;  %s1710_s0 = sld [smem:[#allocation23_spill]] (!%p1159_p7) }
 0x47d   : > { %s1711_s5 = smov (!%p1159_p7), %s1710_s0 }
 0x47e   : > { %v756_v54 = vld [vmem:[%s755_s28] sm:$0x1] }
 0x47f   : > { %v758_v56 = vadd.f32 %v757_v55, %v756_v54 }
 0x481   : > { %759 = vst.msk [vmem:[%s755_s28] sm:$0x1] %vm454_vm8, %v758_v56 }
 0x488   : > { %v762_v57 = vld [vmem:[%s761_s4] sm:$0x1] }
 0x489   : > { %v764_v59 = vadd.f32 %v763_v58, %v762_v57 }
 0x48b   : > { %765 = vst.msk [vmem:[%s761_s4] sm:$0x1] %vm454_vm8, %v764_v59 }
 0x492   : > { %v768_v60 = vld [vmem:[%s767_s7] sm:$0x1] }
 0x493   : > { %v770_v62 = vadd.f32 %v769_v61, %v768_v60 }
 0x495   : > { %771 = vst.msk [vmem:[%s767_s7] sm:$0x1] %vm454_vm8, %v770_v62  ;;  %s1712_s7 = sld [smem:[#allocation19_spill]] (!%p1159_p7) }
 0x49c   : > { %v774_v63 = vld [vmem:[%s773_s2] sm:$0x1] }
 0x49d   : > { %v776_v1 = vadd.f32 %v775_v0, %v774_v63 }
 0x49f   : > { %777 = vst.msk [vmem:[%s773_s2] sm:$0x1] %vm454_vm8, %v776_v1 }
 0x4a6   : > { %v780_v2 = vld [vmem:[%s779_s1] sm:$0x1] }
 0x4a7   : > { %v782_v5 = vadd.f32 %v781_v3, %v780_v2 }
 0x4a9   : > { %783 = vst.msk [vmem:[%s779_s1] sm:$0x1] %vm454_vm8, %v782_v5 }
 0x4b0   : > { %v786_v6 = vld [vmem:[%s785_s9] sm:$0x1] }
 0x4b1   : > { %v788_v8 = vadd.f32 %v787_v7, %v786_v6 }
 0x4b3   : > { %789 = vst.msk [vmem:[%s785_s9] sm:$0x1] %vm454_vm8, %v788_v8 }
 0x4ba   : > { %v792_v10 = vld [vmem:[%s791_s12] sm:$0x1] }
 0x4bb   : > { %v794_v11 = vadd.f32 %v793_v9, %v792_v10 }
 0x4bd   : > { %795 = vst.msk [vmem:[%s791_s12] sm:$0x1] %vm454_vm8, %v794_v11 }
 0x4c4   : > { %v798_v13 = vld [vmem:[%s797_s17] sm:$0x1] }
 0x4c5   : > { %v800_v14 = vadd.f32 %v799_v12, %v798_v13 }
 0x4c7   : > { %801 = vst.msk [vmem:[%s797_s17] sm:$0x1] %vm454_vm8, %v800_v14 }
 0x4ce   : > { %v804_v16 = vld [vmem:[%s803_s27] sm:$0x1] }
 0x4cf   : > { %v806_v17 = vadd.f32 %v805_v15, %v804_v16 }
 0x4d1   : > { %807 = vst.msk [vmem:[%s803_s27] sm:$0x1] %vm454_vm8, %v806_v17 }
 0x4d8   : > { %v810_v19 = vld [vmem:[%s809_s6] sm:$0x1] }
 0x4d9   : > { %v812_v20 = vadd.f32 %v811_v18, %v810_v19 }
 0x4db   : > { %813 = vst.msk [vmem:[%s809_s6] sm:$0x1] %vm454_vm8, %v812_v20 }
 0x4e2   : > { %v816_v22 = vld [vmem:[%s815_s21] sm:$0x1] }
 0x4e3   : > { %v818_v23 = vadd.f32 %v817_v21, %v816_v22 }
 0x4e5   : > { %819 = vst.msk [vmem:[%s815_s21] sm:$0x1] %vm454_vm8, %v818_v23 }
 0x4ec   : > { %v822_v25 = vld [vmem:[%s821_s24] sm:$0x1] }
 0x4ed   : > { %v824_v26 = vadd.f32 %v823_v24, %v822_v25 }
 0x4ef   : > { %825 = vst.msk [vmem:[%s821_s24] sm:$0x1] %vm454_vm8, %v824_v26 }
 0x4f6   : > { %v828_v28 = vld [vmem:[%s827_s10] sm:$0x1] }
 0x4f7   : > { %v830_v29 = vadd.f32 %v829_v27, %v828_v28 }
 0x4f9   : > { %831 = vst.msk [vmem:[%s827_s10] sm:$0x1] %vm454_vm8, %v830_v29 }
 0x4ff   : > { %841 = sbr.rel (%p1159_p7) target bundleno = 1649 (0x671), region = 52 }
 0x500   : > { %v834_v31 = vld [vmem:[%s833_s8] sm:$0x1] }
 0x501   : > { %v836_v32 = vadd.f32 %v835_v30, %v834_v31 }
 0x503   : > { %837 = vst.msk [vmem:[%s833_s8] sm:$0x1] %vm454_vm8, %v836_v32 }
 0x504   : > { %1215 = vmatprep.subr.msk.mxu0 %vm656_vm11, %v1600_v4  ;;  %v940_v37 = vld [vmem:[%s1710_s0 + $0x8] sm:$0xff]  ;;  %v939_v38 = vld [vmem:[%s1711_s5] sm:$0xff]  ;;  %vm941_vm2 = vcmask 130048   ;;  %v1165_v47 = vld [vmem:[#allocation10] ss:$0 sm:$0xff] }
 0x505   : > { %1216 = vmatpush3.msk.msra.mxu0 %vm656_vm11, %v1600_v4  ;;  %1220 = vmatprep.subr.mxu1 %v940_v37  ;;  %v937_v39 = vld [vmem:[%s1712_s7] sm:$0xff]  ;;  %v938_v4 = vld [vmem:[%s1712_s7 + $0x8] sm:$0xff] }
 0x506   : > { %1221 = vmatpush3.msra.mxu1 %v940_v37  ;;  %1224 = vmatprep.mubr.msk.f32.mxu1 %vm941_vm2, %v937_v39 }
 0x507   : > { %1222 = vmatprep.subr.mxu1 %v939_v38 }
 0x508   : > { %1223 = vmatpush3.msra.mxu1 %v939_v38 }
 0x509   : > { %1225 = vmatmul.mubr.msk.f32.vlgmr.msra.gmra.mxu1 %vm941_vm2, %v938_v4 }
 0x50a   : > { %v842_v33 = vld [vmem:[#allocation4] sm:$0xff]  ;;  %v843_v34 = vld [vmem:[#allocation4 + $0x8] sm:$0xff] }
 0x50b   : > { %v844_v35 = vadd.f32 1e-16, %v842_v33  ;;  %v845_v36 = vadd.f32 1e-16, %v843_v34 }
 0x50d   : > { %1272 = vrcp.f32 %v844_v35 }
 0x50e   : > { %1274 = vrcp.f32 %v845_v36 }
 0x51a   : > { %v1273_v40 = vpop.eup %1272 }
 0x51b   : > { %852 = vrot.lane.b32.xlu0 %v1273_v40, %s1377_s18  ;;  %v1275_v41 = vpop.eup %1274 }
 0x51f   : > { %854 = vrot.lane.b32.xlu0 %v1275_v41, %s1377_s18 }
 0x58d   : > { %v853_v42 = vpop.permute.xlu0 %852 }
 0x58e   : > { %1217 = vmatprep.mubr.msk.f32.mxu0 %vm432_vm6, %v853_v42 }
 0x591   : > { %v855_v43 = vpop.permute.xlu0 %854 }
 0x592   : > { %1218 = vmatmul.mubr.msk.f32.vlgmr.msra.gmra.mxu0 %vm432_vm6, %v855_v43 }
 0x5c9   : > { %v1226_v45 = vpop.f32.mrf.mxu1 }
 0x5cb   : > { %v1014_v51 = vpop.f32.mrf.mxu1 }
 0x652   : > { %v1219_v44 = vpop.f32.mrf.mxu0 }
 0x653   : > { %v936_v46 = vmul.f32 %v1219_v44, %v843_v34 }
 0x654   : > { %v926_v48 = vpop.f32.mrf.mxu0 }
 0x655   : > { %v1024_v49 = vadd.f32 %v1226_v45, %v936_v46  ;;  %v935_v50 = vmul.f32 %v926_v48, %v842_v33 }
 0x657   : > { %v1033_v52 = vadd.f32 %v1165_v47, %v1024_v49  ;;  %v1023_v53 = vadd.f32 %v1014_v51, %v935_v50 }
 0x659   : > { %v1037_v54 = vmin.f32 %v1033_v52, 0.0  ;;  %v1032_v55 = vadd.f32 %v1165_v47, %v1023_v53  ;;  %vm1035_vm3 = vcmp.gt.f32.partialorder %v1033_v52, 0.0 }
 0x65b   : > { %v1040_v56 = vmul.f32 1.442695, %v1037_v54  ;;  %v1036_v57 = vmin.f32 %v1032_v55, 0.0  ;;  %vm1034_vm4 = vcmp.gt.f32.partialorder %v1032_v55, 0.0 }
 0x65d   : > { %1276 = vpow2.f32 %v1040_v56  ;;  %v1038_v58 = vmul.f32 1.442695, %v1036_v57 }
 0x65f   : > { %1278 = vpow2.f32 %v1038_v58 }
 0x66a   : > { %v1277_v59 = vpop.eup %1276 }
 0x66b   : > { %v1167_v60 = vadd.f32 -1.0, %v1277_v59 }
 0x66c   : > { %v1279_v61 = vpop.eup %1278 }
 0x66d   : > { %v1045_v62 = vsel %vm1035_vm3, %v1033_v52, %v1167_v60  ;;  %v1166_v63 = vadd.f32 -1.0, %v1279_v61 }
 0x66e   : > { %1047 = vst.msk [vmem:[#allocation13 + $0x8] sm:$0xff] %vm737_vm1, %v1045_v62 }
 0x66f   : > { %v1044_v0 = vsel %vm1034_vm4, %v1032_v55, %v1166_v63 }
 0x670   : > { %1046 = vst.msk [vmem:[#allocation13] sm:$0xff] %vm737_vm1, %v1044_v0 }
 0x671 PF: > { %s1713_s1 = sld [smem:[#allocation18_spill]]  ;;  %s1378_s20 = smov [#allocation13]  }
 0x672   : > { %s1054_s9 = sshll.u32 %s1378_s20, 4  ;;  %s1055_s9 = int_to_ptr.vmem [resolvable:$true] %s1054_s9 }
 0x673   : > { %s1326_s22 = scalar_lea.vmem %s1055_s9, 256  ;;  %p1333_p12 = scmp.lt.s32.totalorder %s1055_s9, %s1055_s9 }
 0x674   : > { %p1327_p9 = scmp.ne.s32.totalorder %s1055_s9, %s1326_s22  ;;  %p1334_p13 = scmp.lt.s32.totalorder %s1326_s22, %s1326_s22 }
 0x676   : > { %p1335_p0 = por %p1334_p13, %p1333_p12 }
 0x677   : > { %p1245_p8 = scmp.eq.s32.totalorder %s1713_s1, 2 }
 0x679   : > { %p1328_p10 = pnand %p1327_p9, %p1245_p8 }
 0x67b   : > { %p1329_p11 = pneg %p1328_p10 }
 0x67d   : > { %p1336_p1 = pnand %p1335_p0, %p1329_p11 }
 0x67f   : > { %1339 = shalt.err (!%p1336_p1)
}
 0x680   : > { %s1379_s12 = smov 128   ;;  %s1380_s26 = smov 8  }
 0x681   : > { %s1714_s27 = sld [smem:[#allocation24_spill]] }
 0x687   : > { %1236 = dma.vmem_to_hbm [thread:$0]  (%p1245_p8), %s1055_s9, 256, %s1714_s27, [#allocation12], %s1379_s12, %s1379_s12, %s1380_s26  }
 0x688   : > { %1361 = dma.done.wait (%p1245_p8), [#allocation12], 256  }
 0x689   : > { %1363 = vsyncadd (%p1245_p8), [#allocation12], 4294967040 }
 0x68a PF: > { %s1715_s19 = sld [smem:[#allocation17_spill]] }
 0x690   : > { %s27_s0 = sadd.s32 1, %s1715_s19  }
 0x691   : > { %p24_p2 = scmp.ge.s32.totalorder %s27_s0, 5  }
 0x693   :  { %26 = sbr.rel (!%p24_p2) target bundleno = 20 (0x14), region = 125 }
 0x698   :  { %1070 = vsyncpa [#allocation11], 1 }
 0x699   :  { %1072 = vsyncpa [#allocation11 + $0x1], 1 }
 0x69a   :  { %1073 = vsyncpa [#allocation12], 1 }
 0x69b   :  { %1075 = vsyncpa [#allocation12 + $0x1], 1 }

</bundles_post_ra>
